<compile_context>
chip_gen: v7x
topology: tpu7x:2x2x1
jax: 0.10.0
libtpu: 0.0.40
codegen_flags: <defaults>
</compile_context>

<pallas_src>
import functools

import jax
import jax.numpy as jnp
from jax import lax
from jax.experimental import pallas as pl
from jax.experimental.pallas import tpu as pltpu

_LANES = 128


# ----------------------------------------------------------------------------
# In-kernel 3x3 conv (BN scale pre-folded into the weights)
# ----------------------------------------------------------------------------
def _conv3x3(padslab, w_ref, out_h, out_w):
    """padslab: (out_h+2, out_w+2, C) bf16 zero-padded activations.
    w_ref: (9*C, Cout) bf16, tap-major (kh*3+kw) then cin. Returns f32
    (out_h*out_w, Cout)."""
    C = padslab.shape[-1]
    if C < 256:
        # Cp == 128: one long-K (K=9*C) matmul fills the 256-deep v6e/v7x MXU.
        # Pre-compute the 3 sublane(dw)-shifted copies once; reuse across dh.
        cols = [padslab[:, dw:dw + out_w, :] for dw in range(3)]
        taps = [cols[dw][dh:dh + out_h] for dh in range(3) for dw in range(3)]
        patches = jnp.concatenate(taps, axis=-1).reshape(out_h * out_w, 9 * C)
        return jnp.dot(patches, w_ref[...], preferred_element_type=jnp.float32)

    # Cp >= 256: K=C already fills the MXU depth on every generation.
    # Accumulate 9 short-K matmuls on direct shifted slices -> no (rows, 9C)
    # im2col slab in VMEM, no lane-axis concatenate.
    acc = None
    for dh in range(3):
        for dw in range(3):
            tap = dh * 3 + dw
            patch = padslab[dh:dh + out_h, dw:dw + out_w, :].reshape(out_h * out_w, C)
            part = jnp.dot(patch, w_ref[tap * C:(tap + 1) * C, :],
                           preferred_element_type=jnp.float32)
            acc = part if acc is None else acc + part
    return acc


# ----------------------------------------------------------------------------
# Kernel: conv1 -> BN1 -> ReLU -> conv2 -> BN2 -> +residual -> ReLU, one tile
# ----------------------------------------------------------------------------
def _basic_block_kernel(x_ref, w1_ref, b1_ref, w2_ref, b2_ref, o_ref):
    """x_ref : (H, W, C) bf16   one NHWC image (C padded to 128 lanes)
    w1_ref : (9*C, C) bf16      conv1 weights with BN1 scale folded in
    b1_ref : (1, C)   f32       BN1 bias
    w2_ref : (9*C, C) bf16      conv2 weights with BN2 scale folded in
    b2_ref : (1, C)   f32       BN2 bias
    o_ref  : (TH, W, C) bf16    output rows [t*TH, (t+1)*TH)
    """
    H, W, C = x_ref.shape
    TH = o_ref.shape[0]
    t = pl.program_id(1)
    last_t = pl.num_programs(1) - 1
    row0 = pl.multiple_of(t * TH, TH)            # first output row of this tile

    # ---- gather the TH+4 input rows this tile needs (2-row halo: conv1+conv2),
    #      zero-masking rows outside the image. No full-image scratch.
    mid = x_ref[pl.ds(row0, TH), :, :]                       # (TH, W, C)
    if TH == H:                                              # single tile: static zero halo
        top = jnp.zeros((2, W, C), x_ref.dtype)
        bot = jnp.zeros((2, W, C), x_ref.dtype)
    else:                                                    # TH >= 2 guaranteed by wrapper
        top = x_ref[pl.ds(jnp.maximum(row0 - 2, 0), 2), :, :]
        top = jnp.where(t > 0, top, jnp.zeros_like(top))
        bot = x_ref[pl.ds(jnp.minimum(row0 + TH, H - 2), 2), :, :]
        bot = jnp.where(t < last_t, bot, jnp.zeros_like(bot))
    rows = jnp.concatenate([top, mid, bot], axis=0)          # (TH+4, W, C)
    zcol = jnp.zeros((TH + 4, 1, C), x_ref.dtype)
    xpad = jnp.concatenate([zcol, rows, zcol], axis=1)       # (TH+4, W+2, C)

    # ---- conv1 (BN1 scale folded) + bias1 + ReLU over TH+2 rows (1-row halo)
    y = _conv3x3(xpad, w1_ref, TH + 2, W)                    # ((TH+2)*W, C) f32
    y = jnp.maximum(y + b1_ref[...], 0.0).reshape(TH + 2, W, C)
    # conv1 rows outside the image act as conv2's zero padding -> mask them.
    r = row0 - 1 + lax.broadcasted_iota(jnp.int32, (TH + 2, 1, 1), 0)
    y = jnp.where((r >= 0) & (r < H), y, 0.0).astype(jnp.bfloat16)

    # ---- conv2 (BN2 scale folded) + bias2 + residual + ReLU -----------------
    zcol2 = jnp.zeros((TH + 2, 1, C), y.dtype)
    ypad = jnp.concatenate([zcol2, y, zcol2], axis=1)        # (TH+2, W+2, C)
    out = _conv3x3(ypad, w2_ref, TH, W) + b2_ref[...]        # (TH*W, C) f32
    out = jnp.maximum(out + mid.reshape(TH * W, C).astype(jnp.float32), 0.0)
    o_ref[...] = out.reshape(TH, W, C).astype(o_ref.dtype)


# ----------------------------------------------------------------------------
# Wrapper helpers (BN folding, tiling / VMEM heuristics)
# ----------------------------------------------------------------------------
def _round_up(n, m):
    return (n + m - 1) // m * m


def _fold_bn_into_conv(w_oihw, gamma, beta, mean, var, cin_pad, cout_pad, eps=1e-5):
    """Fold BN scale into conv weights; pad channels to lane-dense widths."""
    cout, cin = w_oihw.shape[0], w_oihw.shape[1]
    scale = gamma / jnp.sqrt(var + eps)                      # (cout,)
    bias = beta - mean * scale                               # (cout,)
    w = w_oihw * scale[:, None, None, None]                  # per-out-channel scale
    w = jnp.transpose(w, (2, 3, 1, 0))                       # (kh, kw, cin, cout)
    w = jnp.pad(w, ((0, 0), (0, 0), (0, cin_pad - cin), (0, cout_pad - cout)))
    w = w.reshape(9 * cin_pad, cout_pad).astype(jnp.bfloat16)
    b = jnp.pad(bias, (0, cout_pad - cout)).reshape(1, cout_pad).astype(jnp.float32)
    return w, b


def _vmem_capacity_bytes():
    try:
        return int(pltpu.get_tpu_info().vmem_capacity_bytes)
    except Exception:
        return 128 * 1024 * 1024


def _vmem_bytes_estimate(TH, H, W, Cp):
    """Rough per-grid-step VMEM footprint (bytes) for the kernel above."""
    bf, f32 = 2, 4
    rows1, rows2 = (TH + 2) * W, TH * W
    long_k = Cp < 256
    x_blk = 2 * H * W * Cp * bf                  # double-buffered input block
    o_blk = 2 * TH * W * Cp * bf                 # double-buffered output block
    wts = 2 * 9 * Cp * Cp * bf + 2 * Cp * f32    # single-buffered weights + biases
    slab = (TH + 4) * (W + 2) * Cp * bf          # padded input slab
    patches = (rows1 + rows2) * (9 if long_k else 3) * Cp * bf
    acc = (rows1 + rows2) * Cp * (f32 + bf)      # f32 conv outputs + bf16 y
    return x_blk + o_blk + wts + slab + patches + acc


def _pick_row_tile(H, W, Cp, budget):
    """Largest divisor of H whose per-step footprint fits `budget` bytes."""
    for th in range(H, 0, -1):
        if H % th:
            continue
        if th != H and th < 2:                   # halo reads need >= 2 rows per tile
            continue
        if _vmem_bytes_estimate(th, H, W, Cp) <= budget:
            return th
    if H < 2:
        return H
    return min(d for d in range(2, H + 1) if H % d == 0)


def _single_buffered():
    # Weights/biases are grid-invariant -> a single VMEM buffer suffices.
    try:
        return pl.Buffered(1)
    except Exception:                             # compat: older jax
        return None


def _const_spec(shape, mode):
    index_map = lambda n, t: (0,) * len(shape)
    if mode is None:
        return pl.BlockSpec(shape, index_map)
    try:
        return pl.BlockSpec(shape, index_map, pipeline_mode=mode)
    except TypeError:                             # compat: no pipeline_mode kwarg
        return pl.BlockSpec(shape, index_map)


# ----------------------------------------------------------------------------
# Public forward
# ----------------------------------------------------------------------------
@functools.partial(jax.jit, static_argnames=("row_tile",))
def basic_block_forward(x_nchw, params, row_tile=None):
    """BasicBlock.forward (stride=1, dilation=1, downsample=None). NCHW in/out."""
    N, C, H, W = x_nchw.shape
    assert params["conv1_w"].shape == (C, C, 3, 3), "inplanes must equal planes"
    assert params["conv2_w"].shape == (C, C, 3, 3), "inplanes must equal planes"
    # TODO(synk): stride>1 / dilation>1 / downsample branch not implemented
    # (module defaults: stride=1, dilation=1, downsample=None).

    Cp = _round_up(max(C, _LANES), _LANES)                   # lane-dense channels
    cap = _vmem_capacity_bytes()
    if row_tile is None:
        # TODO(synk): for tiny feature maps (7x7/14x14) also block over batch so
        # several images share one grid step (keeps the MXU fed at M >= 256).
        row_tile = _pick_row_tile(H, W, Cp, budget=cap // 2)
    TH = row_tile
    assert H % TH == 0 and (TH == H or TH >= 2), (H, TH)

    # NCHW f32 -> NHWC bf16 (lanes = channels, padded to a multiple of 128).
    # TODO(synk): in a full network keep activations NHWC/bf16/channel-padded
    # between BasicBlocks and hoist these transposes/casts to the network edges.
    x = jnp.transpose(x_nchw, (0, 2, 3, 1)).astype(jnp.bfloat16)
    if Cp != C:
        x = jnp.pad(x, ((0, 0), (0, 0), (0, 0), (0, Cp - C)))

    w1, b1 = _fold_bn_into_conv(params["conv1_w"], params["bn1_gamma"],
                                params["bn1_beta"], params["bn1_mean"],
                                params["bn1_var"], Cp, Cp)
    w2, b2 = _fold_bn_into_conv(params["conv2_w"], params["bn2_gamma"],
                                params["bn2_beta"], params["bn2_mean"],
                                params["bn2_var"], Cp, Cp)

    est = _vmem_bytes_estimate(TH, H, W, Cp)
    vmem_limit = int(min(cap * 3 // 4, max(2 * est + (8 << 20), 32 << 20)))
    single = _single_buffered()

    out = pl.pallas_call(
        _basic_block_kernel,
        out_shape=jax.ShapeDtypeStruct((N, H, W, Cp), jnp.bfloat16),
        grid_spec=pltpu.PrefetchScalarGridSpec(
            num_scalar_prefetch=0,
            grid=(N, H // TH),
            in_specs=[
                pl.BlockSpec((None, H, W, Cp), lambda n, t: (n, 0, 0, 0)),
                _const_spec((9 * Cp, Cp), single),           # w1 (grid-invariant)
                _const_spec((1, Cp), single),                # b1
                _const_spec((9 * Cp, Cp), single),           # w2
                _const_spec((1, Cp), single),                # b2
            ],
            out_specs=pl.BlockSpec((None, TH, W, Cp), lambda n, t: (n, t, 0, 0)),
        ),
        compiler_params=pltpu.CompilerParams(
            dimension_semantics=("parallel", "parallel"),
            vmem_limit_bytes=vmem_limit),
    )(x, w1, b1, w2, b2)

    if Cp != C:
        out = out[..., :C]
    return jnp.transpose(out, (0, 3, 1, 2)).astype(x_nchw.dtype)


# ----------------------------------------------------------------------------
# Pure-JAX reference (correctness check)
# ----------------------------------------------------------------------------
def _ref_forward(x_nchw, params, eps=1e-5):
    def conv(x, w):
        return lax.conv_general_dilated(
            x, w, window_strides=(1, 1), padding=((1, 1), (1, 1)),
            dimension_numbers=("NCHW", "OIHW", "NCHW"))

    def bn(x, g, b, m, v):
        s = g / jnp.sqrt(v + eps)
        return x * s[None, :, None, None] + (b - m * s)[None, :, None, None]

    out = conv(x_nchw, params["conv1_w"])
    out = jnp.maximum(bn(out, params["bn1_gamma"], params["bn1_beta"],
                         params["bn1_mean"], params["bn1_var"]), 0.0)
    out = conv(out, params["conv2_w"])
    out = bn(out, params["bn2_gamma"], params["bn2_beta"],
             params["bn2_mean"], params["bn2_var"])
    return jnp.maximum(out + x_nchw, 0.0)


def _make_params(key, c, w_scale):
    ks = jax.random.split(key, 10)
    return {
        "conv1_w":  jax.random.normal(ks[0], (c, c, 3, 3), jnp.float32) * w_scale,
        "conv2_w":  jax.random.normal(ks[1], (c, c, 3, 3), jnp.float32) * w_scale,
        "bn1_gamma": jax.random.normal(ks[2], (c,), jnp.float32) * 0.1 + 1.0,
        "bn1_beta":  jax.random.normal(ks[3], (c,), jnp.float32) * 0.1,
        "bn1_mean":  jax.random.normal(ks[4], (c,), jnp.float32) * 0.1,
        "bn1_var":   jax.nn.softplus(jax.random.normal(ks[5], (c,), jnp.float32)) + 0.5,
        "bn2_gamma": jax.random.normal(ks[6], (c,), jnp.float32) * 0.1 + 1.0,
        "bn2_beta":  jax.random.normal(ks[7], (c,), jnp.float32) * 0.1,
        "bn2_mean":  jax.random.normal(ks[8], (c,), jnp.float32) * 0.1,
        "bn2_var":   jnp.linspace(0.5, 1.5, c).astype(jnp.float32),
    }


# ----------------------------------------------------------------------------
if __name__ == "__main__":
    key = jax.random.PRNGKey(0)
    k1, k2, k3, k4 = jax.random.split(key, 4)

    # Case 1: Cp=128 (long-K im2col path), row_tile=8 -> grid (N=2, T=2):
    # exercises top/bottom halo masking and interior halo row reads.
    N, C, H, W = 2, 8, 16, 16
    x = jax.random.normal(k1, (N, C, H, W), dtype=jnp.float32)
    params = _make_params(k2, C, w_scale=0.1)
    out = jax.block_until_ready(basic_block_forward(x, params, row_tile=8))
    ref = jax.block_until_ready(_ref_forward(x, params))
    assert out.shape == (N, C, H, W), out.shape
    err1 = float(jnp.max(jnp.abs(out - ref)))
    # bf16 activations/weights with f32 accumulation -> relaxed tolerance.
    assert jnp.allclose(out, ref, atol=5e-2, rtol=5e-2), err1

    # Case 2: Cp=256 (short-K accumulating-matmul path), default row-tile picker.
    N2, C2, H2, W2 = 1, 256, 8, 8
    x2 = jax.random.normal(k3, (N2, C2, H2, W2), dtype=jnp.float32)
    params2 = _make_params(k4, C2, w_scale=0.02)
    out2 = jax.block_until_ready(basic_block_forward(x2, params2))
    ref2 = jax.block_until_ready(_ref_forward(x2, params2))
    assert out2.shape == (N2, C2, H2, W2), out2.shape
    err2 = float(jnp.max(jnp.abs(out2 - ref2)))
    # K = 9*256 bf16 accumulation -> slightly looser absolute tolerance.
    assert jnp.allclose(out2, ref2, atol=1e-1, rtol=5e-2), err2

    print("KERNEL_OK")
</pallas_src>

<mosaic_0001>
module attributes {stable_mosaic.version = 11 : i64} {
  func.func @_basic_block_kernel(%arg0: i32, %arg1: i32, %arg2: memref<1x16x16x128xbf16, #tpu.memory_space<vmem>>, %arg3: memref<1152x128xbf16, #tpu.memory_space<vmem>>, %arg4: memref<1x128xf32, #tpu.memory_space<vmem>>, %arg5: memref<1152x128xbf16, #tpu.memory_space<vmem>>, %arg6: memref<1x128xf32, #tpu.memory_space<vmem>>, %arg7: memref<1x8x16x128xbf16, #tpu.memory_space<vmem>>) attributes {dimension_semantics = [#tpu.dimension_semantics<parallel>, #tpu.dimension_semantics<parallel>], iteration_bounds = array<i64: 2, 2>, scalar_prefetch = 0 : i64, scratch_operands = 0 : i64, tpu.core_type = #tpu.core_type<tc>, window_params = [{transform_indices = @transform_0, window_bounds = array<i64: 1, 16, 16, 128>}, {pipeline_mode = #tpu.pipeline_mode<synchronous>, transform_indices = @transform_1, window_bounds = array<i64: 1152, 128>}, {pipeline_mode = #tpu.pipeline_mode<synchronous>, transform_indices = @transform_2, window_bounds = array<i64: 1, 128>}, {pipeline_mode = #tpu.pipeline_mode<synchronous>, transform_indices = @transform_3, window_bounds = array<i64: 1152, 128>}, {pipeline_mode = #tpu.pipeline_mode<synchronous>, transform_indices = @transform_4, window_bounds = array<i64: 1, 128>}, {transform_indices = @transform_5, window_bounds = array<i64: 1, 8, 16, 128>}]} {
    %c8_i32 = arith.constant 8 : i32
    %0 = arith.muli %arg1, %c8_i32 : i32
    %1 = tpu.assume_multiple %0, 8 : i32
    %c0 = arith.constant 0 : index
    %2 = arith.index_cast %1 : i32 to index
    %c0_0 = arith.constant 0 : index
    %c0_1 = arith.constant 0 : index
    %3 = vector.load %arg2[%c0, %2, %c0_0, %c0_1] : memref<1x16x16x128xbf16, #tpu.memory_space<vmem>>, vector<1x8x16x128xbf16>
    %4 = vector.shape_cast %3 : vector<1x8x16x128xbf16> to vector<8x16x128xbf16>
    %c2_i32 = arith.constant 2 : i32
    %5 = arith.subi %1, %c2_i32 : i32
    %c0_i32 = arith.constant 0 : i32
    %6 = arith.maxsi %5, %c0_i32 : i32
    %c0_2 = arith.constant 0 : index
    %7 = arith.index_cast %6 : i32 to index
    %c0_3 = arith.constant 0 : index
    %c0_4 = arith.constant 0 : index
    %8 = vector.load %arg2[%c0_2, %7, %c0_3, %c0_4] : memref<1x16x16x128xbf16, #tpu.memory_space<vmem>>, vector<1x2x16x128xbf16>
    %9 = vector.shape_cast %8 : vector<1x2x16x128xbf16> to vector<2x16x128xbf16>
    %c0_i32_5 = arith.constant 0 : i32
    %10 = arith.cmpi sgt, %arg1, %c0_i32_5 : i32
    %cst = arith.constant 0.000000e+00 : bf16
    %11 = vector.broadcast %cst : bf16 to vector<2x16x128xbf16>
    %12 = arith.select %10, %9, %11 : vector<2x16x128xbf16>
    %c8_i32_6 = arith.constant 8 : i32
    %13 = arith.addi %1, %c8_i32_6 : i32
    %c14_i32 = arith.constant 14 : i32
    %14 = arith.minsi %13, %c14_i32 : i32
    %c0_7 = arith.constant 0 : index
    %15 = arith.index_cast %14 : i32 to index
    %c0_8 = arith.constant 0 : index
    %c0_9 = arith.constant 0 : index
    %16 = vector.load %arg2[%c0_7, %15, %c0_8, %c0_9] : memref<1x16x16x128xbf16, #tpu.memory_space<vmem>>, vector<1x2x16x128xbf16>
    %17 = vector.shape_cast %16 : vector<1x2x16x128xbf16> to vector<2x16x128xbf16>
    %c1_i32 = arith.constant 1 : i32
    %18 = arith.cmpi slt, %arg1, %c1_i32 : i32
    %cst_10 = arith.constant 0.000000e+00 : bf16
    %19 = vector.broadcast %cst_10 : bf16 to vector<2x16x128xbf16>
    %20 = arith.select %18, %17, %19 : vector<2x16x128xbf16>
    %21 = tpu.concatenate %12, %4, %20 in 0 : vector<2x16x128xbf16>, vector<8x16x128xbf16>, vector<2x16x128xbf16> -> vector<12x16x128xbf16>
    %cst_11 = arith.constant 0.000000e+00 : bf16
    %22 = vector.broadcast %cst_11 : bf16 to vector<12x1x128xbf16>
    %23 = tpu.concatenate %22, %21, %22 in 1 : vector<12x1x128xbf16>, vector<12x16x128xbf16>, vector<12x1x128xbf16> -> vector<12x18x128xbf16>
    %24 = vector.extract_strided_slice %23 {offsets = [0, 0, 0], sizes = [12, 16, 128], strides = [1, 1, 1]} : vector<12x18x128xbf16> to vector<12x16x128xbf16>
    %25 = vector.extract_strided_slice %23 {offsets = [0, 1, 0], sizes = [12, 16, 128], strides = [1, 1, 1]} : vector<12x18x128xbf16> to vector<12x16x128xbf16>
    %26 = vector.extract_strided_slice %23 {offsets = [0, 2, 0], sizes = [12, 16, 128], strides = [1, 1, 1]} : vector<12x18x128xbf16> to vector<12x16x128xbf16>
    %27 = vector.extract_strided_slice %24 {offsets = [0, 0, 0], sizes = [10, 16, 128], strides = [1, 1, 1]} : vector<12x16x128xbf16> to vector<10x16x128xbf16>
    %28 = vector.extract_strided_slice %25 {offsets = [0, 0, 0], sizes = [10, 16, 128], strides = [1, 1, 1]} : vector<12x16x128xbf16> to vector<10x16x128xbf16>
    %29 = vector.extract_strided_slice %26 {offsets = [0, 0, 0], sizes = [10, 16, 128], strides = [1, 1, 1]} : vector<12x16x128xbf16> to vector<10x16x128xbf16>
    %30 = vector.extract_strided_slice %24 {offsets = [1, 0, 0], sizes = [10, 16, 128], strides = [1, 1, 1]} : vector<12x16x128xbf16> to vector<10x16x128xbf16>
    %31 = vector.extract_strided_slice %25 {offsets = [1, 0, 0], sizes = [10, 16, 128], strides = [1, 1, 1]} : vector<12x16x128xbf16> to vector<10x16x128xbf16>
    %32 = vector.extract_strided_slice %26 {offsets = [1, 0, 0], sizes = [10, 16, 128], strides = [1, 1, 1]} : vector<12x16x128xbf16> to vector<10x16x128xbf16>
    %33 = vector.extract_strided_slice %24 {offsets = [2, 0, 0], sizes = [10, 16, 128], strides = [1, 1, 1]} : vector<12x16x128xbf16> to vector<10x16x128xbf16>
    %34 = vector.extract_strided_slice %25 {offsets = [2, 0, 0], sizes = [10, 16, 128], strides = [1, 1, 1]} : vector<12x16x128xbf16> to vector<10x16x128xbf16>
    %35 = vector.extract_strided_slice %26 {offsets = [2, 0, 0], sizes = [10, 16, 128], strides = [1, 1, 1]} : vector<12x16x128xbf16> to vector<10x16x128xbf16>
    %36 = tpu.concatenate %27, %28, %29, %30, %31, %32, %33, %34, %35 in 2 : vector<10x16x128xbf16>, vector<10x16x128xbf16>, vector<10x16x128xbf16>, vector<10x16x128xbf16>, vector<10x16x128xbf16>, vector<10x16x128xbf16>, vector<10x16x128xbf16>, vector<10x16x128xbf16>, vector<10x16x128xbf16> -> vector<10x16x1152xbf16>
    %37 = vector.shape_cast %36 : vector<10x16x1152xbf16> to vector<160x1152xbf16>
    %c0_12 = arith.constant 0 : index
    %c0_13 = arith.constant 0 : index
    %38 = vector.load %arg3[%c0_12, %c0_13] : memref<1152x128xbf16, #tpu.memory_space<vmem>>, vector<1152x128xbf16>
    %cst_14 = arith.constant dense<0.000000e+00> : vector<160x128xf32>
    %39 = tpu.matmul %37, %38, %cst_14 {dimension_numbers = #tpu.dot_dimension_numbers<[1], [0], [0], [1], [0, 0, 1, 1], [], []>} : vector<160x1152xbf16>, vector<1152x128xbf16>, vector<160x128xf32> -> vector<160x128xf32>
    %c0_15 = arith.constant 0 : index
    %c0_16 = arith.constant 0 : index
    %40 = vector.load %arg4[%c0_15, %c0_16] : memref<1x128xf32, #tpu.memory_space<vmem>>, vector<1x128xf32>
    %41 = vector.broadcast %40 : vector<1x128xf32> to vector<160x128xf32>
    %42 = arith.addf %39, %41 : vector<160x128xf32>
    %cst_17 = arith.constant 0.000000e+00 : f32
    %43 = vector.broadcast %cst_17 : f32 to vector<160x128xf32>
    %44 = arith.maximumf %42, %43 : vector<160x128xf32>
    %45 = vector.shape_cast %44 : vector<160x128xf32> to vector<10x16x128xf32>
    %c1_i32_18 = arith.constant 1 : i32
    %46 = arith.subi %1, %c1_i32_18 : i32
    %47 = tpu.iota {dimensions = array<i32: 0>} : vector<10x1x1xi32>
    %48 = vector.broadcast %46 : i32 to vector<10x1x1xi32>
    %49 = arith.addi %48, %47 : vector<10x1x1xi32>
    %c0_i32_19 = arith.constant 0 : i32
    %50 = vector.broadcast %c0_i32_19 : i32 to vector<10x1x1xi32>
    %51 = arith.cmpi sge, %49, %50 : vector<10x1x1xi32>
    %c16_i32 = arith.constant 16 : i32
    %52 = vector.broadcast %c16_i32 : i32 to vector<10x1x1xi32>
    %53 = arith.cmpi slt, %49, %52 : vector<10x1x1xi32>
    %54 = arith.andi %51, %53 : vector<10x1x1xi1>
    %cst_20 = arith.constant 0.000000e+00 : f32
    %55 = vector.shape_cast %54 : vector<10x1x1xi1> to vector<10x1x1xi1>
    %56 = vector.broadcast %55 : vector<10x1x1xi1> to vector<10x16x128xi1>
    %57 = vector.broadcast %cst_20 : f32 to vector<10x16x128xf32>
    %58 = arith.select %56, %45, %57 : vector<10x16x128xi1>, vector<10x16x128xf32>
    %59 = arith.truncf %58 : vector<10x16x128xf32> to vector<10x16x128xbf16>
    %cst_21 = arith.constant 0.000000e+00 : bf16
    %60 = vector.broadcast %cst_21 : bf16 to vector<10x1x128xbf16>
    %61 = tpu.concatenate %60, %59, %60 in 1 : vector<10x1x128xbf16>, vector<10x16x128xbf16>, vector<10x1x128xbf16> -> vector<10x18x128xbf16>
    %62 = vector.extract_strided_slice %61 {offsets = [0, 0, 0], sizes = [10, 16, 128], strides = [1, 1, 1]} : vector<10x18x128xbf16> to vector<10x16x128xbf16>
    %63 = vector.extract_strided_slice %61 {offsets = [0, 1, 0], sizes = [10, 16, 128], strides = [1, 1, 1]} : vector<10x18x128xbf16> to vector<10x16x128xbf16>
    %64 = vector.extract_strided_slice %61 {offsets = [0, 2, 0], sizes = [10, 16, 128], strides = [1, 1, 1]} : vector<10x18x128xbf16> to vector<10x16x128xbf16>
    %65 = vector.extract_strided_slice %62 {offsets = [0, 0, 0], sizes = [8, 16, 128], strides = [1, 1, 1]} : vector<10x16x128xbf16> to vector<8x16x128xbf16>
    %66 = vector.extract_strided_slice %63 {offsets = [0, 0, 0], sizes = [8, 16, 128], strides = [1, 1, 1]} : vector<10x16x128xbf16> to vector<8x16x128xbf16>
    %67 = vector.extract_strided_slice %64 {offsets = [0, 0, 0], sizes = [8, 16, 128], strides = [1, 1, 1]} : vector<10x16x128xbf16> to vector<8x16x128xbf16>
    %68 = vector.extract_strided_slice %62 {offsets = [1, 0, 0], sizes = [8, 16, 128], strides = [1, 1, 1]} : vector<10x16x128xbf16> to vector<8x16x128xbf16>
    %69 = vector.extract_strided_slice %63 {offsets = [1, 0, 0], sizes = [8, 16, 128], strides = [1, 1, 1]} : vector<10x16x128xbf16> to vector<8x16x128xbf16>
    %70 = vector.extract_strided_slice %64 {offsets = [1, 0, 0], sizes = [8, 16, 128], strides = [1, 1, 1]} : vector<10x16x128xbf16> to vector<8x16x128xbf16>
    %71 = vector.extract_strided_slice %62 {offsets = [2, 0, 0], sizes = [8, 16, 128], strides = [1, 1, 1]} : vector<10x16x128xbf16> to vector<8x16x128xbf16>
    %72 = vector.extract_strided_slice %63 {offsets = [2, 0, 0], sizes = [8, 16, 128], strides = [1, 1, 1]} : vector<10x16x128xbf16> to vector<8x16x128xbf16>
    %73 = vector.extract_strided_slice %64 {offsets = [2, 0, 0], sizes = [8, 16, 128], strides = [1, 1, 1]} : vector<10x16x128xbf16> to vector<8x16x128xbf16>
    %74 = tpu.concatenate %65, %66, %67, %68, %69, %70, %71, %72, %73 in 2 : vector<8x16x128xbf16>, vector<8x16x128xbf16>, vector<8x16x128xbf16>, vector<8x16x128xbf16>, vector<8x16x128xbf16>, vector<8x16x128xbf16>, vector<8x16x128xbf16>, vector<8x16x128xbf16>, vector<8x16x128xbf16> -> vector<8x16x1152xbf16>
    %75 = vector.shape_cast %74 : vector<8x16x1152xbf16> to vector<128x1152xbf16>
    %c0_22 = arith.constant 0 : index
    %c0_23 = arith.constant 0 : index
    %76 = vector.load %arg5[%c0_22, %c0_23] : memref<1152x128xbf16, #tpu.memory_space<vmem>>, vector<1152x128xbf16>
    %cst_24 = arith.constant dense<0.000000e+00> : vector<128x128xf32>
    %77 = tpu.matmul %75, %76, %cst_24 {dimension_numbers = #tpu.dot_dimension_numbers<[1], [0], [0], [1], [0, 0, 1, 1], [], []>} : vector<128x1152xbf16>, vector<1152x128xbf16>, vector<128x128xf32> -> vector<128x128xf32>
    %c0_25 = arith.constant 0 : index
    %c0_26 = arith.constant 0 : index
    %78 = vector.load %arg6[%c0_25, %c0_26] : memref<1x128xf32, #tpu.memory_space<vmem>>, vector<1x128xf32>
    %79 = vector.broadcast %78 : vector<1x128xf32> to vector<128x128xf32>
    %80 = arith.addf %77, %79 : vector<128x128xf32>
    %81 = vector.shape_cast %4 : vector<8x16x128xbf16> to vector<128x128xbf16>
    %82 = arith.extf %81 : vector<128x128xbf16> to vector<128x128xf32>
    %83 = arith.addf %80, %82 : vector<128x128xf32>
    %cst_27 = arith.constant 0.000000e+00 : f32
    %84 = vector.broadcast %cst_27 : f32 to vector<128x128xf32>
    %85 = arith.maximumf %83, %84 : vector<128x128xf32>
    %86 = vector.shape_cast %85 : vector<128x128xf32> to vector<8x16x128xf32>
    %87 = arith.truncf %86 : vector<8x16x128xf32> to vector<8x16x128xbf16>
    %c0_28 = arith.constant 0 : index
    %c0_29 = arith.constant 0 : index
    %c0_30 = arith.constant 0 : index
    %c0_31 = arith.constant 0 : index
    %88 = vector.load %arg7[%c0_28, %c0_29, %c0_30, %c0_31] : memref<1x8x16x128xbf16, #tpu.memory_space<vmem>>, vector<1x8x16x128xbf16>
    %89 = vector.shape_cast %88 : vector<1x8x16x128xbf16> to vector<8x16x128xbf16>
    %90 = vector.shape_cast %87 : vector<8x16x128xbf16> to vector<1x8x16x128xbf16>
    tpu.vector_store %arg7[%c0_28, %c0_29, %c0_30, %c0_31], %90 {strides = array<i32>} : memref<1x8x16x128xbf16, #tpu.memory_space<vmem>>, vector<1x8x16x128xbf16>,
    return
  }
  func.func @transform_0(%arg0: i32, %arg1: i32) -> (i32, i32, i32, i32) {
    %c0_i32 = arith.constant 0 : i32
    %c0_i32_0 = arith.constant 0 : i32
    %c0_i32_1 = arith.constant 0 : i32
    %c0_i32_2 = arith.constant 0 : i32
    return %arg0, %c0_i32, %c0_i32_0, %c0_i32_1 : i32, i32, i32, i32
  }
  func.func @transform_1(%arg0: i32, %arg1: i32) -> (i32, i32) {
    %c0_i32 = arith.constant 0 : i32
    %c0_i32_0 = arith.constant 0 : i32
    %c0_i32_1 = arith.constant 0 : i32
    return %c0_i32, %c0_i32_0 : i32, i32
  }
  func.func @transform_2(%arg0: i32, %arg1: i32) -> (i32, i32) {
    %c0_i32 = arith.constant 0 : i32
    %c0_i32_0 = arith.constant 0 : i32
    %c0_i32_1 = arith.constant 0 : i32
    return %c0_i32, %c0_i32_0 : i32, i32
  }
  func.func @transform_3(%arg0: i32, %arg1: i32) -> (i32, i32) {
    %c0_i32 = arith.constant 0 : i32
    %c0_i32_0 = arith.constant 0 : i32
    %c0_i32_1 = arith.constant 0 : i32
    return %c0_i32, %c0_i32_0 : i32, i32
  }
  func.func @transform_4(%arg0: i32, %arg1: i32) -> (i32, i32) {
    %c0_i32 = arith.constant 0 : i32
    %c0_i32_0 = arith.constant 0 : i32
    %c0_i32_1 = arith.constant 0 : i32
    return %c0_i32, %c0_i32_0 : i32, i32
  }
  func.func @transform_5(%arg0: i32, %arg1: i32) -> (i32, i32, i32, i32) {
    %c0_i32 = arith.constant 0 : i32
    %c0_i32_0 = arith.constant 0 : i32
    %c0_i32_1 = arith.constant 0 : i32
    return %arg0, %arg1, %c0_i32, %c0_i32_0 : i32, i32, i32, i32
  }
}

</mosaic_0001>

<bundles_post_ra>
// kernel: basic_block_forward.1
= control target key start
LH: loop header
LB: loop body
LE: loop exit
PB: predicated region body
PF: predicated region fallthrough
CT: control target
= control target key end

     0   :  { %s4787_s18 = smov 0   ;;  %s4789_s19 = smov 0   ;;  %s6289_s0 = inlined_call_operand.vmem [shape: bf16[2,16,16,128], index: 0, kind: input, shape index: {}]   ;;  %s6290_s1 = inlined_call_operand.vmem [shape: bf16[1152,128], index: 1, kind: input, shape index: {}]   ;;  %s6291_s2 = inlined_call_operand.vmem [shape: f32[1,128], index: 2, kind: input, shape index: {}]   ;;  %s6292_s3 = inlined_call_operand.vmem [shape: bf16[1152,128], index: 3, kind: input, shape index: {}]   ;;  %s6293_s4 = inlined_call_operand.vmem [shape: f32[1,128], index: 4, kind: input, shape index: {}]   ;;  %s6294_s5 = inlined_call_operand.vmem [shape: bf16[2,16,16,128], index: 5, kind: output, shape index: {}]  }
   0x1   :  { %s4791_s20 = smov 0   ;;  %s4793_s21 = smov 0  }
   0x2   :  { %s4795_s22 = smov 0  }
   0x3 LB: > { %s24_s23 = sadd.s32 1, %s4747_s20  ;;  %s27_s24 = sadd.s32 1, %s4751_s21  ;;  %s4755_s22 = sphi %s4795_s22, %s15_s22   ;;  %s4751_s21 = sphi %s4793_s21, %s6315_s21   ;;  %s4747_s20 = sphi %s4791_s20, %s6314_s20   ;;  %s4743_s19 = sphi %s4789_s19, %s6313_s19   ;;  %s4739_s18 = sphi %s4787_s18, %s6312_s18  }
   0x4   : > { %p25_p0 = scmp.ge.s32.totalorder %s24_s23, 2  ;;  %p3587_p1 = scmp.ge.s32.totalorder %s4755_s22, 1 }
   0x5   : > { %p201_p2 = scmp.lt.s32.totalorder %s4755_s22, 5 }
   0x6   : > { %s6317_s23 = smov (%p25_p0, %s24_s23), 0  ;;  %s6319_s24 = smov (!%p25_p0, %s27_s24), %s4751_s21 }
   0x7   : > { %p202_p3 = pnand %p3587_p1, %p201_p2  ;;  %p29_p4 = scmp.ge.s32.totalorder %s6319_s24, 2 }
   0x8   : > { %v4549_v0 = vld [vmem:[%s6290_s1 + $0x40] sm:$0xff] (!%p202_p3)   ;;  %v4553_v4 = vld [vmem:[%s6290_s1 + $0x48] sm:$0xff] (!%p202_p3)   ;;  %v4557_v8 = vld [vmem:[%s6290_s1 + $0x50] sm:$0xff] (!%p202_p3)   ;;  %s4861_s8 = sshll.u32 (!%p202_p3), %s4739_s18, 3  ;;  %p234_p5 = scmp.lt.s32.totalorder (!%p202_p3), %s4743_s19, 1  ;;  %vm475_vm1 = vcmask (!%p202_p3), 1040384  }
   0x9   : > { %s6321_s24 = smov (%p29_p4, %s6319_s24), 0  ;;  %205 = sbr.rel (%p202_p3) target bundleno = 817 (0x331), region = 40 }
   0xa   : > { %v4550_v1 = vld [vmem:[%s6290_s1] sm:$0xff] (!%p202_p3)   ;;  %3847 = vmatprep.subr.bf16.mxu0 (!%p202_p3), %v4549_v0  ;;  %v4554_v5 = vld [vmem:[%s6290_s1 + $0x8] sm:$0xff] (!%p202_p3)   ;;  %v4558_v9 = vld [vmem:[%s6290_s1 + $0x10] sm:$0xff] (!%p202_p3)   ;;  %s3597_s15 = sadd.s32 (!%p202_p3), 4294967294, %s4861_s8  ;;  %p281_p7 = scmp.gt.s32.totalorder (!%p202_p3), %s4739_s18, 0  ;;  %vm653_vm4 = vcmask (!%p202_p3), 1046528  }
   0xb   : > { %v4551_v2 = vld [vmem:[%s6290_s1 + $0xc0] sm:$0xff] (!%p202_p3)   ;;  %3848 = vmatpush3.bf16.msra.mxu0 (!%p202_p3), %v4550_v1  ;;  %v4555_v6 = vld [vmem:[%s6290_s1 + $0xc8] sm:$0xff] (!%p202_p3)   ;;  %v4559_v10 = vld [vmem:[%s6290_s1 + $0xd0] sm:$0xff] (!%p202_p3)   ;;  %p272_p6 = scmp.gt.s32.totalorder (!%p202_p3), %s3597_s15, 0  ;;  %s3781_s26 = sshll.u32 (!%p202_p3), %s4739_s18, 6 }
   0xc   : > { %v4552_v3 = vld [vmem:[%s6290_s1 + $0x80] sm:$0xff] (!%p202_p3)   ;;  %3923 = vmatprep.subr.bf16.mxu1 (!%p202_p3), %v4551_v2  ;;  %3849 = vmatprep.subr.bf16.mxu0 (!%p202_p3), %v4553_v4  ;;  %v4556_v7 = vld [vmem:[%s6290_s1 + $0x88] sm:$0xff] (!%p202_p3)   ;;  %v4560_v11 = vld [vmem:[%s6290_s1 + $0x90] sm:$0xff] (!%p202_p3)   ;;  %vm476_vm2 = vsmask.f32 (!%p202_p3), 256  ;;  %p299_p9 = scmp.lt.s32.totalorder (!%p202_p3), %s4739_s18, 1 }
   0xd   : > { %3924 = vmatpush3.bf16.msra.mxu1 (!%p202_p3), %v4552_v3  ;;  %v4561_v12 = vld [vmem:[%s6290_s1 + $0x58] sm:$0xff] (!%p202_p3)   ;;  %v4565_v16 = vld [vmem:[%s6290_s1 + $0x60] sm:$0xff] (!%p202_p3)   ;;  %v4569_v20 = vld [vmem:[%s6290_s1 + $0x68] sm:$0xff] (!%p202_p3)   ;;  %vm502_vm5 = vsmask.f32 (!%p202_p3), 7424  ;;  %s3687_s25 = sadd.s32 (!%p202_p3), 4294967295, %s4861_s8 }
   0xe   : > { %3925 = vmatprep.subr.bf16.mxu1 (!%p202_p3), %v4555_v6  ;;  %v4562_v13 = vld [vmem:[%s6290_s1 + $0x18] sm:$0xff] (!%p202_p3)   ;;  %v4566_v17 = vld [vmem:[%s6290_s1 + $0x20] sm:$0xff] (!%p202_p3)   ;;  %v4570_v21 = vld [vmem:[%s6290_s1 + $0x28] sm:$0xff] (!%p202_p3)   ;;  %p242_p10 = scmp.lt.s32.totalorder (!%p202_p3), %s4861_s8, 15 }
   0xf   : > { %3850 = vmatpush3.bf16.msra.mxu0 (!%p202_p3), %v4554_v5  ;;  %v4563_v14 = vld [vmem:[%s6290_s1 + $0xd8] sm:$0xff] (!%p202_p3)   ;;  %v4567_v18 = vld [vmem:[%s6290_s1 + $0xe0] sm:$0xff] (!%p202_p3)   ;;  %v4571_v22 = vld [vmem:[%s6290_s1 + $0xe8] sm:$0xff] (!%p202_p3)  }
  0x10   : > { %3851 = vmatprep.subr.bf16.mxu0 %v4557_v8  ;;  %v4564_v15 = vld [vmem:[%s6290_s1 + $0x98] sm:$0xff]   ;;  %v4568_v19 = vld [vmem:[%s6290_s1 + $0xa0] sm:$0xff]   ;;  %s6323_s19 = smov (!%p234_p5, %s4743_s19), 1  ;;  %s6325_s15 = smov (!%p272_p6, %s3597_s15), 0  ;;  %v4572_v23 = vld [vmem:[%s6290_s1 + $0xa8] sm:$0xff]  }
  0x11   : > { %3926 = vmatpush3.bf16.msra.mxu1 %v4556_v7  ;;  %s3779_s16 = sshll.u32 %s6323_s19, 7  ;;  %v4573_v24 = vld [vmem:[%s6290_s1 + $0x70] sm:$0xff]   ;;  %s3782_s9 = sshll.u32 %s6325_s15, 3  ;;  %v4577_v28 = vld [vmem:[%s6290_s1 + $0x78] sm:$0xff]   ;;  %v4581_v35 = vld [vmem:[%s6290_s1 + $0x140] sm:$0xff]  }
  0x12   : > { %3927 = vmatprep.subr.bf16.mxu1 %v4559_v10  ;;  %v4574_v25 = vld [vmem:[%s6290_s1 + $0x30] sm:$0xff]   ;;  %s4914_s7 = scalar_lea.vmem %s6289_s0, %s3779_s16  ;;  %v4578_v29 = vld [vmem:[%s6290_s1 + $0x38] sm:$0xff]   ;;  %vm4941_vm3 = vmand %vm475_vm1, %vm476_vm2  ;;  %s289_s15 = sadd.s32 8, %s4861_s8 }
  0x13   : > { %3852 = vmatpush3.bf16.msra.mxu0 %v4558_v9  ;;  %v4575_v26 = vld [vmem:[%s6290_s1 + $0xf0] sm:$0xff]   ;;  %s276_s16 = scalar_lea.vmem %s4914_s7, %s3782_s9  ;;  %v4579_v30 = vld [vmem:[%s6290_s1 + $0xf8] sm:$0xff]   ;;  %s4935_s30 = scalar_lea.vmem %s4914_s7, %s3781_s26 }
  0x14   : > { %3853 = vmatprep.subr.bf16.mxu0 %v4561_v12  ;;  %v4576_v27 = vld [vmem:[%s6290_s1 + $0xb0] sm:$0xff]   ;;  %s282_s27 = scalar_select %p281_p7, 1, 0  ;;  %v277_v31 = vld [vmem:[%s276_s16] sm:$0xf]  ;;  %v4580_v34 = vld [vmem:[%s6290_s1 + $0xb8] sm:$0xff]  }
  0x15   : > { %3928 = vmatpush3.bf16.msra.mxu1 %v4560_v11  ;;  %v278_v32 = vld [vmem:[%s276_s16 + $0x4] sm:$0xf]  ;;  %v279_v38 = vld [vmem:[%s276_s16 + $0x8] sm:$0xf]  ;;  %v280_v39 = vld [vmem:[%s276_s16 + $0xc] sm:$0xf] }
  0x16   : > { %3929 = vmatprep.subr.bf16.mxu1 %v4563_v14  ;;  %v283_v33 = vstv %s282_s27  ;;  %v255_v44 = vld [vmem:[%s4935_s30] sm:$0xff]   ;;  %v257_v57 = vld [vmem:[%s4935_s30 + $0x8] sm:$0xff]   ;;  %p5074_p8 = scmp.lt.s32.totalorder %s289_s15, 14  ;;  %s6329_s8 = smov (!%p242_p10, %s4861_s8), 15 }
  0x17   : > { %3854 = vmatpush3.bf16.msra.mxu0 %v4562_v13  ;;  %vm284_vm0 = vcmp.eq.s32.totalorder %v283_v33, 1  ;;  %v382_v50 = vshrl.u32 %v255_v44, 16  ;;  %v385_v51 = vshll.u32 %v255_v44, 16  ;;  %s5132_s13 = scalar_select %p299_p9, 1, 0 }
  0x18   : > { %3855 = vmatprep.subr.bf16.mxu0 %v4565_v16  ;;  %v285_v36 = vsel %vm284_vm0, %v277_v31, 0  ;;  %v286_v37 = vsel %vm284_vm0, %v278_v32, 0  ;;  %v287_v41 = vsel %vm284_vm0, %v279_v38, 0  ;;  %v288_v42 = vsel %vm284_vm0, %v280_v39, 0  ;;  %v259_v16 = vld [vmem:[%s4935_s30 + $0x10] sm:$0xff]   ;;  %v4598_v32 = vld [vmem:[%s6290_s1 + $0x1c0] sm:$0xff]  }
  0x19   : > { %3930 = vmatpush3.bf16.msra.mxu1 %v4564_v15  ;;  %v3602_v40 = vcombine.low %v285_v36, %v286_v37  ;;  %v3603_v43 = vcombine.low %v287_v41, %v288_v42  ;;  %v384_v56 = vrot.slane %v382_v50, 7  ;;  %v399_v36 = vshll.u32 %v259_v16, 16  ;;  %v4998_v37 = vld [vmem:[%s4935_s30 + $0x20] sm:$0xff]   ;;  %v4587_v41 = vld [vmem:[%s6290_s1 + $0x150] sm:$0xff]   ;;  %v4601_v50 = vld [vmem:[%s6290_s1 + $0x1c8] sm:$0xff]   ;;  %s6327_s15 = smov (!%p5074_p8, %s289_s15), 14 }
  0x1a   : > { %3931 = vmatprep.subr.bf16.mxu1 %v4567_v18  ;;  %v389_v18 = vshrl.u32 %v257_v57, 16  ;;  %s3783_s6 = sshll.u32 %s6327_s15, 3  ;;  %s3591_s14 = sshll.u32 %s6329_s8, 1 }
  0x1b   : > { %3856 = vmatpush3.bf16.msra.mxu0 %v4566_v17  ;;  %v368_v45 = vshrl.u32 %v3602_v40, 16  ;;  %v371_v46 = vshll.u32 %v3602_v40, 16  ;;  %v375_v47 = vshrl.u32 %v3603_v43, 16  ;;  %v378_v48 = vshll.u32 %v3603_v43, 16  ;;  %v4588_v43 = vld [vmem:[%s6290_s1 + $0x110] sm:$0xff]   ;;  %s5217_s15 = scalar_lea.vmem %s4914_s7, %s3783_s6 }
  0x1c   : > { %3857 = vmatprep.subr.bf16.mxu0 %v4569_v20  ;;  %v387_v0 = vor.u32 %v385_v51, %v384_v56  ;;  %v4966_v14 = vsel %vm4941_vm3, %v384_v56, 0  ;;  %v4582_v20 = vld [vmem:[%s6290_s1 + $0x100] sm:$0xff]  }
  0x1d   : > { %3932 = vmatpush3.bf16.msra.mxu1 %v4568_v19  ;;  %v370_v49 = vrot.slane %v368_v45, 7  ;;  %v377_v53 = vrot.slane %v375_v47, 7  ;;  %v4971_v19 = vld [vmem:[%s4935_s30 + $0x18] sm:$0xff]   ;;  %v661_v51 = vrot.slane %v4966_v14, 1 }
  0x1e   : > { %3933 = vmatprep.subr.bf16.mxu1 %v4571_v22  ;;  %v4961_v11 = vsel %vm4941_vm3, 0, %v387_v0 }
  0x1f   : > { %3858 = vmatpush3.bf16.msra.mxu0 %v4570_v21  ;;  %v373_v54 = vor.u32 %v371_v46, %v370_v49  ;;  %v490_v55 = vsel %vm4941_vm3, %v370_v49, 0  ;;  %v380_v59 = vor.u32 %v378_v48, %v377_v53  ;;  %v491_v60 = vsel %vm4941_vm3, %v377_v53, 0  ;;  %v4590_v48 = vld [vmem:[%s6290_s1 + $0x158] sm:$0xff]   ;;  %v4600_v49 = vld [vmem:[%s6290_s1 + $0x180] sm:$0xff]  }
  0x20   : > { %3859 = vmatprep.subr.bf16.mxu0 %v4573_v24  ;;  %v511_v58 = vshll.u32 %v490_v55, 16  ;;  %v655_v62 = vrot.slane %v490_v55, 1  ;;  %v523_v63 = vshll.u32 %v491_v60, 16  ;;  %v658_v7 = vrot.slane %v491_v60, 1 }
  0x21   : > { %3934 = vmatpush3.bf16.msra.mxu1 %v4572_v23  ;;  %v478_v61 = vsel %vm4941_vm3, 0, %v373_v54  ;;  %v4954_v3 = vsel %vm4941_vm3, 0, %v380_v59  ;;  %v530_v15 = vshll.u32 %v4961_v11, 16  ;;  %v528_v23 = vshrl.u32 %v4961_v11, 16 }
  0x22   : > { %3935 = vmatprep.subr.bf16.mxu1 %v4575_v26  ;;  %v504_v1 = vshrl.u32 %v478_v61, 16  ;;  %v506_v2 = vshll.u32 %v478_v61, 16  ;;  %1460 = vmatprep.mubr.bf16.mxu1 %v4954_v3  ;;  %v654_v4 = vrot.slane %v478_v61, 1  ;;  %v516_v5 = vshrl.u32 %v4954_v3, 16  ;;  %v4584_v26 = vld [vmem:[%s6290_s1 + $0x148] sm:$0xff]  }
  0x23   : > { %3860 = vmatpush3.bf16.msra.mxu0 %v4574_v25  ;;  %v518_v6 = vshll.u32 %v4954_v3, 16  ;;  %v513_v9 = vrot.slane %v511_v58, 1  ;;  %v525_v10 = vrot.slane %v523_v63, 1  ;;  %v657_v22 = vrot.slane %v4954_v3, 1 }
  0x24   : > { %3861 = vmatprep.subr.bf16.mxu0 %v4577_v28  ;;  %v508_v8 = vrot.slane %v506_v2, 1  ;;  %v656_v12 = vsel %vm653_vm4, %v654_v4, %v655_v62  ;;  %v392_v24 = vshll.u32 %v257_v57, 16  ;;  %v535_v28 = vshll.u32 %v4966_v14, 16  ;;  %v4604_v62 = vld [vmem:[%s6290_s1 + $0x1d0] sm:$0xff]   ;;  %v5056_v2 = vld [vmem:[%s4935_s30 + $0x28] sm:$0xff]  }
  0x25   : > { %3936 = vmatpush3.bf16.msra.mxu1 %v4576_v27  ;;  %v520_v13 = vrot.slane %v518_v6, 1  ;;  %v532_v27 = vrot.slane %v530_v15, 1  ;;  %v4992_v33 = vsel %vm653_vm4, %v657_v22, %v658_v7  ;;  %v403_v46 = vshrl.u32 %v4971_v19, 16  ;;  %v4593_v6 = vld [vmem:[%s6290_s1 + $0x160] sm:$0xff]   ;;  %v4605_v7 = vld [vmem:[%s6290_s1 + $0x190] sm:$0xff]   ;;  %v4597_v14 = vld [vmem:[%s6290_s1 + $0x168] sm:$0xff]  }
  0x26   : > { %3937 = vmatprep.subr.bf16.mxu1 %v4579_v30  ;;  %v509_v17 = vor.u32 %v508_v8, %v504_v1  ;;  %v537_v39 = vrot.slane %v535_v28, 1  ;;  %v660_v47 = vrot.slane %v4961_v11, 1  ;;  %v406_v60 = vshll.u32 %v4971_v19, 16  ;;  %v4591_v1 = vld [vmem:[%s6290_s1 + $0x118] sm:$0xff]   ;;  %v5112_v28 = vld [vmem:[%s4935_s30 + $0x30] sm:$0xff]  }
  0x27   : > { %3862 = vmatpush3.bf16.msra.mxu0 %v4578_v29  ;;  %v521_v21 = vor.u32 %v520_v13, %v516_v5  ;;  %v391_v29 = vrot.slane %v389_v18, 7  ;;  %v533_v38 = vor.u32 %v532_v27, %v528_v23  ;;  %v405_v59 = vrot.slane %v403_v46, 7  ;;  %v4608_v15 = vld [vmem:[%s6290_s1 + $0x1d8] sm:$0xff]  }
  0x28   : > { %3999 = vmatprep.subr.bf16.mxu0 %v4581_v35  ;;  %v514_v25 = vsel %vm502_vm5, %v509_v17, %v513_v9  ;;  %v396_v35 = vshrl.u32 %v259_v16, 16  ;;  %v410_v63 = vshrl.u32 %v4998_v37, 16  ;;  %v5050_v0 = vsel %vm653_vm4, %v660_v47, %v661_v51  ;;  %v4609_v22 = vld [vmem:[%s6290_s1 + $0x198] sm:$0xff]  }
  0x29   : > { %3938 = vmatpush3.bf16.msra.mxu1 %v4580_v34  ;;  %1347 = vmatprep.mubr.bf16.mxu0 %v514_v25  ;;  %v4985_v30 = vsel %vm502_vm5, %v521_v21, %v525_v10  ;;  %v394_v31 = vor.u32 %v392_v24, %v391_v29  ;;  %v4585_v34 = vld [vmem:[%s6290_s1 + $0x108] sm:$0xff]   ;;  %v5009_v42 = vsel %vm4941_vm3, %v391_v29, 0  ;;  %v5031_v55 = vsel %vm502_vm5, %v533_v38, %v537_v39  ;;  %v4595_v10 = vld [vmem:[%s6290_s1 + $0x120] sm:$0xff]   ;;  %v4613_v51 = vld [vmem:[%s6290_s1 + $0x178] sm:$0xff]  }
  0x2a   : > { %1348 = vmatmul.mubr.bf16.vlgmr.msra.gmra.mrb[0].mxu0 %v478_v61  ;;  %4075 = vmatprep.subr.bf16.mxu1 %v4598_v32  ;;  %v398_v45 = vrot.slane %v396_v35, 7  ;;  %v547_v53 = vshll.u32 %v5009_v42, 16  ;;  %v4602_v61 = vld [vmem:[%s6290_s1 + $0x188] sm:$0xff]   ;;  %v408_v9 = vor.u32 %v406_v60, %v405_v59  ;;  %v413_v13 = vshll.u32 %v4998_v37, 16  ;;  %v4611_v29 = vld [vmem:[%s6290_s1 + $0x1e0] sm:$0xff]  }
  0x2b   : > { %4000 = vmatpush3.bf16.msra.mxu0 %v4582_v20  ;;  %1355 = vmatprep.mubr.bf16.mxu0 %v4985_v30  ;;  %v5002_v40 = vsel %vm4941_vm3, 0, %v394_v31  ;;  %v664_v17 = vrot.slane %v5009_v42, 1  ;;  %v5103_v24 = vsel %vm4941_vm3, %v405_v59, 0  ;;  %v4599_v25 = vld [vmem:[%s6290_s1 + $0x128] sm:$0xff]   ;;  %v417_v27 = vshrl.u32 %v5056_v2, 16  ;;  %v4612_v37 = vld [vmem:[%s6290_s1 + $0x1a0] sm:$0xff]  }
  0x2c   : > { %1461 = vmatmul.mubr.bf16.vlgmr.msra.gmra.mrb[0].mxu1 %v656_v12  ;;  %4001 = vmatprep.subr.bf16.mxu0 %v4584_v26  ;;  %v542_v44 = vshll.u32 %v5002_v40, 16  ;;  %v401_v54 = vor.u32 %v399_v36, %v398_v45  ;;  %v540_v56 = vshrl.u32 %v5002_v40, 16  ;;  %v549_v5 = vrot.slane %v547_v53, 1  ;;  %v4606_v36 = vld [vmem:[%s6290_s1 + $0x170] sm:$0xff]  }
  0x2d   : > { %1468 = vmatprep.mubr.bf16.mxu1 %v4961_v11  ;;  %4076 = vmatpush3.bf16.msra.mxu1 %v4600_v49  ;;  %v5067_v8 = vsel %vm4941_vm3, %v398_v45, 0  ;;  %v412_v12 = vrot.slane %v410_v63, 7  ;;  %v663_v16 = vrot.slane %v5002_v40, 1  ;;  %v5099_v23 = vsel %vm4941_vm3, 0, %v408_v9 }
  0x2e   : > { %v544_v57 = vrot.slane %v542_v44, 1  ;;  %v5036_v58 = vsel %vm4941_vm3, 0, %v401_v54  ;;  %4077 = vmatprep.subr.bf16.mxu1 %v4601_v50  ;;  %v559_v21 = vshll.u32 %v5067_v8, 16  ;;  %v566_v35 = vshll.u32 %v5099_v23, 16  ;;  %v4614_v44 = vld [vmem:[%s6290_s1 + $0x1e8] sm:$0xff]  }
  0x2f   : > { %4002 = vmatpush3.bf16.msra.mxu0 %v4585_v34  ;;  %v552_v19 = vshrl.u32 %v5036_v58, 16  ;;  %v415_v26 = vor.u32 %v413_v13, %v412_v12  ;;  %v5119_v31 = vsel %vm653_vm4, %v663_v16, %v664_v17  ;;  %v666_v38 = vrot.slane %v5036_v58, 1  ;;  %v4618_v16 = vld [vmem:[%s6290_s1 + $0x1b0] sm:$0xff]  }
  0x30   : > { %4003 = vmatprep.subr.bf16.mxu0 %v4587_v41  ;;  %v545_v4 = vor.u32 %v544_v57, %v540_v56  ;;  %v561_v34 = vrot.slane %v559_v21, 1  ;;  %v667_v39 = vrot.slane %v5067_v8, 1  ;;  %v564_v41 = vshrl.u32 %v5099_v23, 16  ;;  %v5170_v57 = vld [vmem:[%s4935_s30 + $0x38] sm:$0xff]  }
  0x31   : > { %4078 = vmatpush3.bf16.msra.mxu1 %v4602_v61  ;;  %v5138_v42 = vsel %vm4941_vm3, 0, %v415_v26  ;;  %v571_v45 = vshll.u32 %v5103_v24, 16  ;;  %v419_v46 = vrot.slane %v417_v27, 7  ;;  %v420_v47 = vshll.u32 %v5056_v2, 16  ;;  %v4616_v2 = vld [vmem:[%s6290_s1 + $0x1a8] sm:$0xff]  }
  0x32   : > { %1356 = vmatmul.mubr.bf16.gmra.mrb[4].mxu0 %v4954_v3  ;;  %v554_v3 = vshll.u32 %v5036_v58, 16  ;;  %4079 = vmatprep.subr.bf16.mxu1 %v4604_v62  ;;  %v5090_v18 = vsel %vm502_vm5, %v545_v4, %v549_v5  ;;  %v568_v50 = vrot.slane %v566_v35, 1  ;;  %v578_v53 = vshll.u32 %v5138_v42, 16  ;;  %v296_v35 = vld [vmem:[%s5217_s15 + $0x4] sm:$0xf] }
  0x33   : > { %1363 = vmatprep.mubr.bf16.mxu0 %v5031_v55  ;;  %4004 = vmatpush3.bf16.msra.mxu0 %v4588_v43  ;;  %v5142_v43 = vsel %vm4941_vm3, %v412_v12, 0  ;;  %v669_v56 = vrot.slane %v5099_v23, 1  ;;  %v301_v59 = vstv %s5132_s13  ;;  %v5175_v60 = vsel %vm653_vm4, %v666_v38, %v667_v39  ;;  %v4617_v12 = vld [vmem:[%s6290_s1 + $0x1f0] sm:$0xff]  }
  0x34   : > { %1469 = vmatmul.mubr.bf16.gmra.mrb[4].mxu1 %v4992_v33  ;;  %4005 = vmatprep.subr.bf16.mxu0 %v4590_v48  ;;  %v556_v20 = vrot.slane %v554_v3, 1  ;;  %v4607_v48 = vld [vmem:[%s6290_s1 + $0x130] sm:$0xff]   ;;  %v583_v54 = vshll.u32 %v5142_v43, 16  ;;  %v422_v61 = vor.u32 %v420_v47, %v419_v46  ;;  %v5179_v62 = vsel %vm4941_vm3, %v419_v46, 0 }
  0x35   : > { %1476 = vmatprep.mubr.bf16.mxu1 %v5002_v40  ;;  %4080 = vmatpush3.bf16.msra.mxu1 %v4605_v7  ;;  %v424_v63 = vshrl.u32 %v5112_v28, 16  ;;  %v569_v4 = vor.u32 %v568_v50, %v564_v41  ;;  %v573_v5 = vrot.slane %v571_v45, 1  ;;  %v670_v3 = vrot.slane %v5103_v24, 1  ;;  %v4619_v24 = vld [vmem:[%s6290_s1 + $0x1f8] sm:$0xff]  }
  0x36   : > { %4081 = vmatprep.subr.bf16.mxu1 %v4608_v15  ;;  %v557_v32 = vor.u32 %v556_v20, %v552_v19  ;;  %v580_v7 = vrot.slane %v578_v53, 1  ;;  %v585_v8 = vrot.slane %v583_v54, 1  ;;  %v672_v9 = vrot.slane %v5138_v42, 1  ;;  %v297_v53 = vld [vmem:[%s5217_s15 + $0x8] sm:$0xf] }
  0x37   : > { %4006 = vmatpush3.bf16.msra.mxu0 %v4591_v1  ;;  %v4615_v1 = vld [vmem:[%s6290_s1 + $0x138] sm:$0xff]   ;;  %vm5192_vm6 = vcmp.eq.s32.totalorder %v301_v59, 1  ;;  %v673_v13 = vrot.slane %v5142_v43, 1  ;;  %v427_v15 = vshll.u32 %v5112_v28, 16  ;;  %v5209_v17 = vsel %vm4941_vm3, 0, %v422_v61 }
  0x38   : > { %4007 = vmatprep.subr.bf16.mxu0 %v4593_v6  ;;  %v5154_v49 = vsel %vm502_vm5, %v557_v32, %v561_v34  ;;  %v576_v6 = vshrl.u32 %v5138_v42, 16  ;;  %v426_v19 = vrot.slane %v424_v63, 7  ;;  %v5212_v20 = vsel %vm502_vm5, %v569_v4, %v573_v5  ;;  %v295_v34 = vld [vmem:[%s5217_s15] sm:$0xf]  ;;  %v298_v61 = vld [vmem:[%s5217_s15 + $0xc] sm:$0xf] }
  0x39   : > { %4082 = vmatpush3.bf16.msra.mxu1 %v4609_v22  ;;  %v588_v21 = vshrl.u32 %v5209_v17, 16  ;;  %v431_v22 = vshrl.u32 %v5170_v57, 16  ;;  %v5228_v26 = vsel %vm653_vm4, %v669_v56, %v670_v3  ;;  %v590_v27 = vshll.u32 %v5209_v17, 16  ;;  %s3592_s15 = sshll.u32 %s6323_s19, 5 }
  0x3a   : > { %1364 = vmatmul.mubr.bf16.gmra.mrb[8].mxu0 %v4961_v11  ;;  %4083 = vmatprep.subr.bf16.mxu1 %v4611_v29  ;;  %v429_v28 = vor.u32 %v427_v15, %v426_v19  ;;  %v5234_v29 = vld [vmem:[%s6290_s1 + $0x200] sm:$0xff]   ;;  %v581_v32 = vor.u32 %v580_v7, %v576_v6  ;;  %v303_v43 = vsel %vm5192_vm6, %v295_v34, 0  ;;  %v675_v46 = vrot.slane %v5209_v17, 1  ;;  %s246_s17 = sadd.s32 %s3592_s15, %s3591_s14 }
  0x3b   : > { %1371 = vmatprep.mubr.bf16.mxu0 %v5090_v18  ;;  %4008 = vmatpush3.bf16.msra.mxu0 %v4595_v10  ;;  %v592_v38 = vrot.slane %v590_v27, 1  ;;  %v676_v47 = vrot.slane %v5179_v62, 1  ;;  %v5263_v54 = vsel %vm653_vm4, %v672_v9, %v673_v13  ;;  %s3593_s19 = sshll.u32 %s246_s17, 2 }
  0x3c   : > { %1477 = vmatmul.mubr.bf16.gmra.mrb[8].mxu1 %v5050_v0  ;;  %4009 = vmatprep.subr.bf16.mxu0 %v4597_v14  ;;  %v595_v14 = vshll.u32 %v5179_v62, 16  ;;  %v5245_v39 = vsel %vm4941_vm3, 0, %v429_v28  ;;  %v5248_v41 = vsel %vm502_vm5, %v581_v32, %v585_v8  ;;  %v305_v62 = vsel %vm5192_vm6, %v297_v53, 0  ;;  %s6247_s16 = scalar_lea.vmem %s6294_s5, %s3593_s19 }
  0x3d   : > { %1484 = vmatprep.mubr.bf16.mxu1 %v5036_v58  ;;  %4084 = vmatpush3.bf16.msra.mxu1 %v4612_v37  ;;  %v433_v37 = vrot.slane %v431_v22, 7  ;;  %v602_v56 = vshll.u32 %v5245_v39, 16  ;;  %v600_v63 = vshrl.u32 %v5245_v39, 16  ;;  %v5286_v9 = vsel %vm653_vm4, %v675_v46, %v676_v47 }
  0x3e   : > { %4085 = vmatprep.subr.bf16.mxu1 %v4614_v44  ;;  %v304_v44 = vsel %vm5192_vm6, %v296_v35, 0  ;;  %v597_v45 = vrot.slane %v595_v14, 1 }
  0x3f   : > { %4010 = vmatpush3.bf16.msra.mxu0 %v4599_v25  ;;  %v4620_v25 = vld [vmem:[%s6290_s1 + $0x1b8] sm:$0xff]   ;;  %v3612_v59 = vcombine.low %v303_v43, %v304_v44  ;;  %v604_v5 = vrot.slane %v602_v56, 1  ;;  %v4622_v43 = vld [vmem:[%s6290_s1 + $0x208] sm:$0xff]   ;;  %v4623_v44 = vld [vmem:[%s6290_s1 + $0x210] sm:$0xff]  }
  0x40   : > { %4011 = vmatprep.subr.bf16.mxu0 %v4606_v36  ;;  %v498_v36 = vsel %vm4941_vm3, %v426_v19, 0 }
  0x41   : > { %4086 = vmatpush3.bf16.msra.mxu1 %v4616_v2  ;;  %v607_v50 = vshll.u32 %v498_v36, 16  ;;  %v438_v3 = vshrl.u32 %v3612_v59, 16  ;;  %v605_v13 = vor.u32 %v604_v5, %v600_v63  ;;  %v679_v19 = vrot.slane %v498_v36, 1 }
  0x42   : > { %1372 = vmatmul.mubr.bf16.gmra.mrb[12].mxu0 %v5002_v40  ;;  %4087 = vmatprep.subr.bf16.mxu1 %v4617_v12  ;;  %v441_v12 = vshll.u32 %v3612_v59, 16 }
  0x43   : > { %1379 = vmatprep.mubr.bf16.mxu0 %v5154_v49  ;;  %4012 = vmatpush3.bf16.msra.mxu0 %v4607_v48  ;;  %v434_v48 = vshll.u32 %v5170_v57, 16  ;;  %v593_v57 = vor.u32 %v592_v38, %v588_v21  ;;  %v609_v7 = vrot.slane %v607_v50, 1  ;;  %v5288_v10 = vrot.slane %v438_v3, 7 }
  0x44   : > { %1485 = vmatmul.mubr.bf16.gmra.mrb[12].mxu1 %v5119_v31  ;;  %4013 = vmatprep.subr.bf16.mxu0 %v4613_v51  ;;  %v499_v51 = vsel %vm4941_vm3, %v433_v37, 0 }
  0x45   : > { %1492 = vmatprep.mubr.bf16.mxu1 %v5099_v23  ;;  %4088 = vmatpush3.bf16.msra.mxu1 %v4618_v16  ;;  %v436_v2 = vor.u32 %v434_v48, %v433_v37  ;;  %v5277_v6 = vsel %vm502_vm5, %v593_v57, %v597_v45  ;;  %v619_v15 = vshll.u32 %v499_v51, 16  ;;  %v678_v16 = vrot.slane %v5245_v39, 1 }
  0x46   : > { %4089 = vmatprep.subr.bf16.mxu1 %v4619_v24  ;;  %v682_v22 = vrot.slane %v499_v51, 1  ;;  %v443_v24 = vor.u32 %v441_v12, %v5288_v10 }
  0x47   : > { %4014 = vmatpush3.bf16.msra.mxu0 %v4615_v1  ;;  %v306_v1 = vsel %vm5192_vm6, %v298_v61, 0  ;;  %v5281_v8 = vsel %vm4941_vm3, 0, %v436_v2  ;;  %v621_v28 = vrot.slane %v619_v15, 1  ;;  %v5302_v32 = vsel %vm653_vm4, %v678_v16, %v679_v19 }
  0x48   : > { %4441 = vmatprep.subr.bf16.mxu0 %v5234_v29  ;;  %v5272_v4 = vcombine.low %v305_v62, %v306_v1  ;;  %v614_v14 = vshll.u32 %v5281_v8, 16  ;;  %v612_v21 = vshrl.u32 %v5281_v8, 16  ;;  %v5306_v34 = vsel %vm4941_vm3, 0, %v443_v24 }
  0x49   : > { %4090 = vmatpush3.bf16.msra.mxu1 %v4620_v25  ;;  %v5297_v25 = vsel %vm502_vm5, %v605_v13, %v609_v7  ;;  %v681_v35 = vrot.slane %v5281_v8, 1  ;;  %v709_v62 = vrot.slane %v5306_v34, 1 }
  0x4a   : > { %1380 = vmatmul.mubr.bf16.gmra.mrb[16].mxu0 %v5036_v58  ;;  %v616_v27 = vrot.slane %v614_v14, 1  ;;  %v5423_v14 = vld [vmem:[%s6291_s2] ss:$0 sm:$0xff] }
  0x4b   : > { %1387 = vmatprep.mubr.bf16.mxu0 %v5212_v20  ;;  %v5317_v38 = vsel %vm653_vm4, %v681_v35, %v682_v22 }
  0x4c   : > { %1493 = vmatmul.mubr.bf16.gmra.mrb[16].mxu1 %v5175_v60  ;;  %v617_v36 = vor.u32 %v616_v27, %v612_v21 }
  0x4d   : > { %1500 = vmatprep.mubr.bf16.mxu1 %v5138_v42 }
  0x4e   : > { %v5312_v37 = vsel %vm502_vm5, %v617_v36, %v621_v28 }
  0x52   : > { %1388 = vmatmul.mubr.bf16.gmra.mrb[20].mxu0 %v5099_v23 }
  0x53   : > { %1395 = vmatprep.mubr.bf16.mxu0 %v5248_v41 }
  0x54   : > { %1501 = vmatmul.mubr.bf16.gmra.mrb[20].mxu1 %v5228_v26 }
  0x55   : > { %1508 = vmatprep.mubr.bf16.mxu1 %v5209_v17 }
  0x5a   : > { %1396 = vmatmul.mubr.bf16.gmra.mrb[24].mxu0 %v5138_v42 }
  0x5b   : > { %1403 = vmatprep.mubr.bf16.mxu0 %v5277_v6 }
  0x5c   : > { %1509 = vmatmul.mubr.bf16.gmra.mrb[24].mxu1 %v5263_v54 }
  0x5d   : > { %1516 = vmatprep.mubr.bf16.mxu1 %v5245_v39 }
  0x62   : > { %1404 = vmatmul.mubr.bf16.gmra.mrb[28].mxu0 %v5209_v17 }
  0x63   : > { %1411 = vmatprep.mubr.bf16.mxu0 %v5297_v25 }
  0x64   : > { %1517 = vmatmul.mubr.bf16.gmra.mrb[28].mxu1 %v5286_v9 }
  0x65   : > { %1524 = vmatprep.mubr.bf16.mxu1 %v5281_v8 }
  0x6a   : > { %1412 = vmatmul.mubr.bf16.gmra.mrb[32].mxu0 %v5245_v39 }
  0x6b   : > { %1419 = vmatprep.mubr.bf16.mxu0 %v5312_v37 }
  0x6c   : > { %1525 = vmatmul.mubr.bf16.gmra.mrb[32].mxu1 %v5302_v32 }
  0x6d   : > { %1532 = vmatprep.mubr.bf16.mxu1 %v5306_v34 }
  0x72   : > { %1420 = vmatmul.mubr.bf16.gmra.mrb[36].mxu0 %v5281_v8 }
  0x73   : > { %1573 = vmatprep.mubr.bf16.mxu0 %v4992_v33  ;;  %v4626_v33 = vld [vmem:[%s6290_s1 + $0x228] sm:$0xff]  }
  0x74   : > { %1533 = vmatmul.mubr.bf16.gmra.mrb[36].mxu1 %v5317_v38 }
  0x75   : > { %1686 = vmatprep.mubr.bf16.mxu1 %v5031_v55 }
  0x7a   : > { %1574 = vmatmul.mubr.bf16.vlgmr.msra.gmra.mrb[40].mxu0 %v4985_v30  ;;  %v4625_v30 = vld [vmem:[%s6290_s1 + $0x220] sm:$0xff]  }
  0x7b   : > { %4442 = vmatpush3.bf16.msra.mxu0 %v5234_v29  ;;  %1581 = vmatprep.mubr.bf16.mxu0 %v5050_v0 }
  0x7c   : > { %1687 = vmatmul.mubr.bf16.vlgmr.msra.gmra.mrb[40].mxu1 %v4961_v11  ;;  %4443 = vmatprep.subr.bf16.mxu0 %v4622_v43  ;;  %v4624_v11 = vld [vmem:[%s6290_s1 + $0x218] sm:$0xff]  }
  0x7d   : > { %1694 = vmatprep.mubr.bf16.mxu1 %v5090_v18 }
  0x7f   : > { %4444 = vmatpush3.bf16.msra.mxu0 %v4622_v43 }
  0x80   : > { %4445 = vmatprep.subr.bf16.mxu0 %v4623_v44 }
  0x82   : > { %1582 = vmatmul.mubr.bf16.gmra.mrb[44].mxu0 %v5031_v55  ;;  %v4628_v55 = vld [vmem:[%s6290_s1 + $0x238] sm:$0xff]  }
  0x83   : > { %1589 = vmatprep.mubr.bf16.mxu0 %v5119_v31  ;;  %4446 = vmatpush3.bf16.msra.mxu0 %v4623_v44  ;;  %v4635_v44 = vld [vmem:[%s6292_s3 + $0x58] sm:$0xff]  }
  0x84   : > { %1695 = vmatmul.mubr.bf16.gmra.mrb[44].mxu1 %v5002_v40  ;;  %4447 = vmatprep.subr.bf16.mxu0 %v4624_v11  ;;  %v4627_v40 = vld [vmem:[%s6290_s1 + $0x230] sm:$0xff]  }
  0x85   : > { %1702 = vmatprep.mubr.bf16.mxu1 %v5154_v49 }
  0x87   : > { %4448 = vmatpush3.bf16.msra.mxu0 %v4624_v11 }
  0x88   : > { %4449 = vmatprep.subr.bf16.mxu0 %v4625_v30 }
  0x8a   : > { %1590 = vmatmul.mubr.bf16.gmra.mrb[48].mxu0 %v5090_v18 }
  0x8b   : > { %1597 = vmatprep.mubr.bf16.mxu0 %v5175_v60  ;;  %4450 = vmatpush3.bf16.msra.mxu0 %v4625_v30 }
  0x8c   : > { %1703 = vmatmul.mubr.bf16.gmra.mrb[48].mxu1 %v5036_v58  ;;  %4451 = vmatprep.subr.bf16.mxu0 %v4626_v33  ;;  %v445_v58 = vshrl.u32 %v5272_v4, 16 }
  0x8d   : > { %1710 = vmatprep.mubr.bf16.mxu1 %v5212_v20 }
  0x8e   : > { %v447_v18 = vrot.slane %v445_v58, 7 }
  0x8f   : > { %4452 = vmatpush3.bf16.msra.mxu0 %v4626_v33 }
  0x90   : > { %4453 = vmatprep.subr.bf16.mxu0 %v4627_v40  ;;  %v501_v51 = vsel %vm4941_vm3, %v447_v18, 0 }
  0x91   : > { %v721_v59 = vshll.u32 %v501_v51, 16 }
  0x92   : > { %1598 = vmatmul.mubr.bf16.gmra.mrb[52].mxu0 %v5154_v49  ;;  %v697_v49 = vshll.u32 %v5306_v34, 16 }
  0x93   : > { %1605 = vmatprep.mubr.bf16.mxu0 %v5228_v26  ;;  %4454 = vmatpush3.bf16.msra.mxu0 %v4627_v40  ;;  %v723_v61 = vrot.slane %v721_v59, 1 }
  0x94   : > { %1711 = vmatmul.mubr.bf16.gmra.mrb[52].mxu1 %v5099_v23  ;;  %4455 = vmatprep.subr.bf16.mxu0 %v4628_v55  ;;  %v448_v23 = vshll.u32 %v5272_v4, 16  ;;  %v699_v45 = vrot.slane %v697_v49, 1  ;;  %v729_v4 = vrot.slane %v501_v51, 1 }
  0x95   : > { %1718 = vmatprep.mubr.bf16.mxu1 %v5248_v41 }
  0x96   : > { %v450_v29 = vor.u32 %v448_v23, %v447_v18  ;;  %v4636_v23 = vld [vmem:[%s6292_s3 + $0x18] sm:$0xff]  }
  0x97   : > { %4456 = vmatpush3.bf16.msra.mxu0 %v4628_v55 }
  0x9a   : > { %1606 = vmatmul.mubr.bf16.gmra.mrb[56].mxu0 %v5212_v20  ;;  %v695_v20 = vshrl.u32 %v5306_v34, 16 }
  0x9b   : > { %1613 = vmatprep.mubr.bf16.mxu0 %v5263_v54 }
  0x9c   : > { %1719 = vmatmul.mubr.bf16.gmra.mrb[56].mxu1 %v5138_v42  ;;  %v500_v42 = vsel %vm4941_vm3, %v5288_v10, 0  ;;  %v700_v47 = vor.u32 %v699_v45, %v695_v20 }
  0x9d   : > { %1726 = vmatprep.mubr.bf16.mxu1 %v5277_v6  ;;  %v702_v46 = vshll.u32 %v500_v42, 16  ;;  %v710_v57 = vrot.slane %v500_v42, 1 }
  0x9f   : > { %v704_v48 = vrot.slane %v702_v46, 1  ;;  %v711_v1 = vsel %vm653_vm4, %v709_v62, %v710_v57  ;;  %v4637_v62 = vld [vmem:[%s6292_s3 + $0x60] sm:$0xff]  }
  0xa0   : > { %v4640_v57 = vld [vmem:[%s6292_s3 + $0x80] sm:$0xff]  }
  0xa2   : > { %1614 = vmatmul.mubr.bf16.gmra.mrb[60].mxu0 %v5248_v41  ;;  %v705_v41 = vsel %vm502_vm5, %v700_v47, %v704_v48 }
  0xa3   : > { %1621 = vmatprep.mubr.bf16.mxu0 %v5286_v9 }
  0xa4   : > { %1727 = vmatmul.mubr.bf16.gmra.mrb[60].mxu1 %v5209_v17  ;;  %v489_v17 = vsel %vm4941_vm3, 0, %v450_v29 }
  0xa5   : > { %1734 = vmatprep.mubr.bf16.mxu1 %v5297_v25  ;;  %v716_v50 = vshll.u32 %v489_v17, 16  ;;  %v714_v53 = vshrl.u32 %v489_v17, 16  ;;  %v728_v2 = vrot.slane %v489_v17, 1 }
  0xa7   : > { %v718_v56 = vrot.slane %v716_v50, 1  ;;  %v730_v5 = vsel %vm653_vm4, %v728_v2, %v729_v4 }
  0xaa   : > { %1622 = vmatmul.mubr.bf16.gmra.mrb[64].mxu0 %v5277_v6 }
  0xab   : > { %1629 = vmatprep.mubr.bf16.mxu0 %v5302_v32 }
  0xac   : > { %1735 = vmatmul.mubr.bf16.gmra.mrb[64].mxu1 %v5245_v39  ;;  %v719_v39 = vor.u32 %v718_v56, %v714_v53  ;;  %v4639_v56 = vld [vmem:[%s6292_s3 + $0xc0] sm:$0xff]  }
  0xad   : > { %1742 = vmatprep.mubr.bf16.mxu1 %v5312_v37  ;;  %4233 = vmatprep.subr.bf16.mxu0 %v4639_v56 }
  0xae   : > { %v724_v63 = vsel %vm502_vm5, %v719_v39, %v723_v61 }
  0xb2   : > { %1630 = vmatmul.mubr.bf16.gmra.mrb[68].mxu0 %v5297_v25 }
  0xb3   : > { %1637 = vmatprep.mubr.bf16.mxu0 %v5317_v38 }
  0xb4   : > { %1743 = vmatmul.mubr.bf16.gmra.mrb[68].mxu1 %v5281_v8  ;;  %v4633_v8 = vld [vmem:[%s6292_s3 + $0x50] sm:$0xff]  }
  0xb5   : > { %1750 = vmatprep.mubr.bf16.mxu1 %v705_v41 }
  0xba   : > { %1638 = vmatmul.mubr.bf16.gmra.mrb[72].mxu0 %v5312_v37 }
  0xbb   : > { %1645 = vmatprep.mubr.bf16.mxu0 %v711_v1 }
  0xbc   : > { %1751 = vmatmul.mubr.bf16.gmra.mrb[72].mxu1 %v5306_v34 }
  0xbd   : > { %1758 = vmatprep.mubr.bf16.mxu1 %v724_v63 }
  0xc2   : > { %1646 = vmatmul.mubr.bf16.gmra.mrb[76].mxu0 %v705_v41 }
  0xc3   : > { %4457 = vmatprep.mubr.bf16.mxu0 %v5050_v0  ;;  %v4629_v0 = vld [vmem:[%s6292_s3 + $0x40] sm:$0xff]  }
  0xc4   : > { %1759 = vmatmul.mubr.bf16.gmra.mrb[76].mxu1 %v489_v17  ;;  %4169 = vmatprep.subr.bf16.mxu1 %v4629_v0  ;;  %v4638_v0 = vld [vmem:[%s6292_s3 + $0x20] sm:$0xff]  }
  0xca   : > { %4458 = vmatmul.mubr.bf16.vlgmr.msra.gmra.mrb[80].mxu0 %v5119_v31  ;;  %v4630_v31 = vld [vmem:[%s6292_s3] sm:$0xff]  }
  0xcb   : > { %4461 = vmatprep.mubr.bf16.mxu0 %v5175_v60  ;;  %4170 = vmatpush3.bf16.msra.mxu1 %v4630_v31  ;;  %v4631_v60 = vld [vmem:[%s6292_s3 + $0x48] sm:$0xff]  }
  0xcc   : > { %4171 = vmatprep.subr.bf16.mxu1 %v4631_v60  ;;  %4234 = vmatpush3.bf16.msra.mxu0 %v4640_v57  ;;  %v4641_v60 = vld [vmem:[%s6292_s3 + $0xc8] sm:$0xff]  }
  0xcd   : > { %4235 = vmatprep.subr.bf16.mxu0 %v4641_v60 }
  0xd2   : > { %4462 = vmatmul.mubr.bf16.gmra.mrb[84].mxu0 %v5228_v26  ;;  %v4632_v26 = vld [vmem:[%s6292_s3 + $0x8] sm:$0xff]  }
  0xd3   : > { %4465 = vmatprep.mubr.bf16.mxu0 %v5263_v54  ;;  %4172 = vmatpush3.bf16.msra.mxu1 %v4632_v26 }
  0xd4   : > { %4173 = vmatprep.subr.bf16.mxu1 %v4633_v8 }
  0xda   : > { %4466 = vmatmul.mubr.bf16.gmra.mrb[88].mxu0 %v5286_v9  ;;  %v4634_v9 = vld [vmem:[%s6292_s3 + $0x10] sm:$0xff]  }
  0xdb   : > { %4469 = vmatprep.mubr.bf16.mxu0 %v5302_v32  ;;  %4174 = vmatpush3.bf16.msra.mxu1 %v4634_v9 }
  0xdc   : > { %4175 = vmatprep.subr.bf16.mxu1 %v4635_v44 }
  0xdf   : > { %4176 = vmatpush3.bf16.msra.mxu1 %v4636_v23 }
  0xe0   : > { %4177 = vmatprep.subr.bf16.mxu1 %v4637_v62 }
  0xe2   : > { %4470 = vmatmul.mubr.bf16.gmra.mrb[92].mxu0 %v5317_v38 }
  0xe3   : > { %4473 = vmatprep.mubr.bf16.mxu0 %v711_v1  ;;  %4178 = vmatpush3.bf16.msra.mxu1 %v4638_v0  ;;  %v4656_v0 = vld [vmem:[%s6292_s3 + $0xb0] sm:$0xff]  }
  0xea   : > { %4474 = vmatmul.mubr.bf16.gmra.mrb[96].mxu0 %v730_v5 }
  0xfd   : > { %v3863_v12 = vpop.f32.mrb[0].mxu0 }
  0xfe   : > { %v3864_v15 = vpop.f32.mrb[1].mxu0 }
  0xff   : > { %v3939_v54 = vpop.f32.mrb[0].mxu1  ;;  %v3865_v16 = vadd.f32 %v3864_v15, %v3863_v12  ;;  %v3866_v19 = vpop.f32.mrb[2].mxu0  ;;  %v4645_v12 = vld [vmem:[%s6292_s3 + $0xd0] sm:$0xff]  }
 0x100   : > { %v3940_v3 = vpop.f32.mrb[1].mxu1  ;;  %v3867_v21 = vpop.f32.mrb[3].mxu0 }
 0x101   : > { %v3941_v6 = vadd.f32 %v3940_v3, %v3939_v54  ;;  %v3942_v7 = vpop.f32.mrb[2].mxu1  ;;  %v1350_v22 = vadd.f32 %v3865_v16, %v5423_v14  ;;  %v3868_v24 = vadd.f32 %v3867_v21, %v3866_v19  ;;  %v4646_v19 = vld [vmem:[%s6292_s3 + $0x90] sm:$0xff]  }
 0x102   : > { %v3943_v10 = vpop.f32.mrb[3].mxu1 }
 0x103   : > { %v3944_v13 = vadd.f32 %v3943_v10, %v3942_v7  ;;  %v1353_v28 = vadd.f32 %v3868_v24, %v5423_v14  ;;  %v5427_v32 = vadd.f32 %v3941_v6, %v1350_v22  ;;  %v4642_v6 = vld [vmem:[%s6292_s3 + $0x88] sm:$0xff]  }
 0x104   : > { %4236 = vmatpush3.bf16.msra.mxu0 %v4642_v6 }
 0x105   : > { %v5429_v37 = vadd.f32 %v3944_v13, %v1353_v28  ;;  %v3869_v38 = vpop.f32.mrb[4].mxu0  ;;  %4237 = vmatprep.subr.bf16.mxu0 %v4645_v12  ;;  %v4643_v28 = vld [vmem:[%s6292_s3 + $0x68] sm:$0xff]  }
 0x106   : > { %v3870_v11 = vpop.f32.mrb[5].mxu0  ;;  %4179 = vmatprep.subr.bf16.mxu1 %v4643_v28 }
 0x107   : > { %v3945_v25 = vpop.f32.mrb[4].mxu1  ;;  %v3871_v30 = vadd.f32 %v3870_v11, %v3869_v38  ;;  %v3872_v33 = vpop.f32.mrb[6].mxu0  ;;  %v4648_v11 = vld [vmem:[%s6292_s3 + $0x98] sm:$0xff]  }
 0x108   : > { %v3946_v27 = vpop.f32.mrb[5].mxu1  ;;  %v3873_v40 = vpop.f32.mrb[7].mxu0  ;;  %4238 = vmatpush3.bf16.msra.mxu0 %v4646_v19  ;;  %v4652_v19 = vld [vmem:[%s6292_s3 + $0x30] sm:$0xff]  }
 0x109   : > { %v3947_v34 = vadd.f32 %v3946_v27, %v3945_v25  ;;  %v3948_v35 = vpop.f32.mrb[6].mxu1  ;;  %v1358_v55 = vadd.f32 %v3871_v30, %v5423_v14  ;;  %v3874_v58 = vadd.f32 %v3873_v40, %v3872_v33 }
 0x10a   : > { %v3949_v36 = vpop.f32.mrb[7].mxu1 }
 0x10b   : > { %v3950_v43 = vadd.f32 %v3949_v36, %v3948_v35  ;;  %v1361_v42 = vadd.f32 %v3874_v58, %v5423_v14  ;;  %v5439_v29 = vadd.f32 %v3947_v34, %v1358_v55  ;;  %v4644_v34 = vld [vmem:[%s6292_s3 + $0x28] sm:$0xff]   ;;  %v4647_v36 = vld [vmem:[%s6292_s3 + $0xd8] sm:$0xff]   ;;  %v4649_v58 = vld [vmem:[%s6292_s3 + $0xe0] sm:$0xff]  }
 0x10c   : > { %4180 = vmatpush3.bf16.msra.mxu1 %v4644_v34  ;;  %4239 = vmatprep.subr.bf16.mxu0 %v4647_v36 }
 0x10d   : > { %v5441_v17 = vadd.f32 %v3950_v43, %v1361_v42  ;;  %v3875_v47 = vpop.f32.mrb[8].mxu0  ;;  %4240 = vmatpush3.bf16.msra.mxu0 %v4648_v11  ;;  %v4651_v42 = vld [vmem:[%s6292_s3 + $0xa0] sm:$0xff]  }
 0x10e   : > { %v3876_v50 = vpop.f32.mrb[9].mxu0  ;;  %4241 = vmatprep.subr.bf16.mxu0 %v4649_v58 }
 0x10f   : > { %v3951_v18 = vpop.f32.mrb[8].mxu1  ;;  %v3877_v51 = vadd.f32 %v3876_v50, %v3875_v47  ;;  %v3878_v41 = vpop.f32.mrb[10].mxu0 }
 0x110   : > { %v3952_v49 = vpop.f32.mrb[9].mxu1  ;;  %v3879_v53 = vpop.f32.mrb[11].mxu0 }
 0x111   : > { %v3953_v20 = vadd.f32 %v3952_v49, %v3951_v18  ;;  %v3954_v45 = vpop.f32.mrb[10].mxu1  ;;  %v1366_v59 = vadd.f32 %v3877_v51, %v5423_v14  ;;  %v3880_v39 = vadd.f32 %v3879_v53, %v3878_v41  ;;  %4242 = vmatpush3.bf16.msra.mxu0 %v4651_v42  ;;  %v4653_v51 = vld [vmem:[%s6292_s3 + $0xe8] sm:$0xff]  }
 0x112   : > { %v3955_v46 = vpop.f32.mrb[11].mxu1  ;;  %4243 = vmatprep.subr.bf16.mxu0 %v4653_v51 }
 0x113   : > { %v3956_v48 = vadd.f32 %v3955_v46, %v3954_v45  ;;  %v1369_v1 = vadd.f32 %v3880_v39, %v5423_v14  ;;  %v5454_v2 = vadd.f32 %v3953_v20, %v1366_v59  ;;  %v4654_v59 = vld [vmem:[%s6292_s3 + $0xa8] sm:$0xff]  }
 0x115   : > { %v5462_v26 = vadd.f32 %v3956_v48, %v1369_v1  ;;  %v3881_v54 = vpop.f32.mrb[12].mxu0  ;;  %4244 = vmatpush3.bf16.msra.mxu0 %v4654_v59 }
 0x116   : > { %v3882_v7 = vpop.f32.mrb[13].mxu0 }
 0x117   : > { %v3957_v61 = vpop.f32.mrb[12].mxu1  ;;  %v3883_v8 = vadd.f32 %v3882_v7, %v3881_v54  ;;  %v3884_v9 = vpop.f32.mrb[14].mxu0 }
 0x118   : > { %v3958_v63 = vpop.f32.mrb[13].mxu1  ;;  %v3885_v10 = vpop.f32.mrb[15].mxu0 }
 0x119   : > { %v3959_v4 = vadd.f32 %v3958_v63, %v3957_v61  ;;  %v3960_v5 = vpop.f32.mrb[14].mxu1  ;;  %v1374_v13 = vadd.f32 %v3883_v8, %v5423_v14  ;;  %v3886_v15 = vadd.f32 %v3885_v10, %v3884_v9  ;;  %v4655_v63 = vld [vmem:[%s6292_s3 + $0xf0] sm:$0xff]   ;;  %v4659_v8 = vld [vmem:[%s6292_s3 + $0xf8] sm:$0xff]  }
 0x11a   : > { %v3961_v31 = vpop.f32.mrb[15].mxu1  ;;  %4245 = vmatprep.subr.bf16.mxu0 %v4655_v63 }
 0x11b   : > { %v3962_v3 = vadd.f32 %v3961_v31, %v3960_v5  ;;  %v1377_v22 = vadd.f32 %v3886_v15, %v5423_v14  ;;  %v5475_v24 = vadd.f32 %v3959_v4, %v1374_v13  ;;  %4246 = vmatpush3.bf16.msra.mxu0 %v4656_v0  ;;  %v4650_v13 = vld [vmem:[%s6292_s3 + $0x70] sm:$0xff]   ;;  %v4660_v15 = vld [vmem:[%s6292_s3 + $0xb8] sm:$0xff]  }
 0x11c   : > { %4247 = vmatprep.subr.bf16.mxu0 %v4659_v8  ;;  %4181 = vmatprep.subr.bf16.mxu1 %v4650_v13 }
 0x11d   : > { %v5486_v38 = vadd.f32 %v3962_v3, %v1377_v22  ;;  %v3887_v43 = vpop.f32.mrb[16].mxu0  ;;  %4182 = vmatpush3.bf16.msra.mxu1 %v4652_v19 }
 0x11e   : > { %v3888_v30 = vpop.f32.mrb[17].mxu0 }
 0x11f   : > { %v3963_v16 = vpop.f32.mrb[16].mxu1  ;;  %v3889_v33 = vadd.f32 %v3888_v30, %v3887_v43  ;;  %v3890_v40 = vpop.f32.mrb[18].mxu0  ;;  %4248 = vmatpush3.bf16.msra.mxu0 %v4660_v15  ;;  %v4658_v43 = vld [vmem:[%s6292_s3 + $0x38] sm:$0xff]  }
 0x120   : > { %v3964_v21 = vpop.f32.mrb[17].mxu1  ;;  %v3891_v55 = vpop.f32.mrb[19].mxu0 }
 0x121   : > { %v3965_v25 = vadd.f32 %v3964_v21, %v3963_v16  ;;  %v3966_v27 = vpop.f32.mrb[18].mxu1  ;;  %v1382_v18 = vadd.f32 %v3889_v33, %v5423_v14  ;;  %v3892_v23 = vadd.f32 %v3891_v55, %v3890_v40 }
 0x122   : > { %v3967_v35 = vpop.f32.mrb[19].mxu1 }
 0x123   : > { %v3968_v44 = vadd.f32 %v3967_v35, %v3966_v27  ;;  %v1385_v45 = vadd.f32 %v3892_v23, %v5423_v14  ;;  %v5499_v46 = vadd.f32 %v3965_v25, %v1382_v18  ;;  %v4657_v35 = vld [vmem:[%s6292_s3 + $0x78] sm:$0xff]  }
 0x124   : > { %4183 = vmatprep.subr.bf16.mxu1 %v4657_v35 }
 0x125   : > { %v5504_v41 = vadd.f32 %v3968_v44, %v1385_v45  ;;  %v3893_v53 = vpop.f32.mrb[20].mxu0  ;;  %4184 = vmatpush3.bf16.msra.mxu1 %v4658_v43 }
 0x126   : > { %v3894_v39 = vpop.f32.mrb[21].mxu0 }
 0x127   : > { %v3969_v49 = vpop.f32.mrb[20].mxu1  ;;  %v3895_v61 = vadd.f32 %v3894_v39, %v3893_v53  ;;  %v3896_v62 = vpop.f32.mrb[22].mxu0 }
 0x128   : > { %v3970_v20 = vpop.f32.mrb[21].mxu1  ;;  %v3897_v57 = vpop.f32.mrb[23].mxu0 }
 0x129   : > { %v3971_v47 = vadd.f32 %v3970_v20, %v3969_v49  ;;  %v3972_v48 = vpop.f32.mrb[22].mxu1  ;;  %v1390_v1 = vadd.f32 %v3895_v61, %v5423_v14  ;;  %v3898_v4 = vadd.f32 %v3897_v57, %v3896_v62 }
 0x12a   : > { %v3973_v50 = vpop.f32.mrb[23].mxu1 }
 0x12b   : > { %v3974_v56 = vadd.f32 %v3973_v50, %v3972_v48  ;;  %v1393_v60 = vadd.f32 %v3898_v4, %v5423_v14  ;;  %v5517_v54 = vadd.f32 %v3971_v47, %v1390_v1 }
 0x12d   : > { %v5522_v9 = vadd.f32 %v3974_v56, %v1393_v60  ;;  %v3899_v10 = vpop.f32.mrb[24].mxu0 }
 0x12e   : > { %v3900_v16 = vpop.f32.mrb[25].mxu0 }
 0x12f   : > { %v3975_v5 = vpop.f32.mrb[24].mxu1  ;;  %v3901_v21 = vadd.f32 %v3900_v16, %v3899_v10  ;;  %v3902_v22 = vpop.f32.mrb[26].mxu0 }
 0x130   : > { %v3976_v31 = vpop.f32.mrb[25].mxu1  ;;  %v3903_v25 = vpop.f32.mrb[27].mxu0 }
 0x131   : > { %v3977_v3 = vadd.f32 %v3976_v31, %v3975_v5  ;;  %v3978_v6 = vpop.f32.mrb[26].mxu1  ;;  %v1398_v27 = vadd.f32 %v3901_v21, %v5423_v14  ;;  %v3904_v28 = vadd.f32 %v3903_v25, %v3902_v22 }
 0x132   : > { %v3979_v7 = vpop.f32.mrb[27].mxu1 }
 0x133   : > { %v3980_v12 = vadd.f32 %v3979_v7, %v3978_v6  ;;  %v1401_v44 = vadd.f32 %v3904_v28, %v5423_v14  ;;  %v5541_v11 = vadd.f32 %v3977_v3, %v1398_v27 }
 0x135   : > { %v5543_v55 = vadd.f32 %v3980_v12, %v1401_v44  ;;  %v3905_v58 = vpop.f32.mrb[28].mxu0  ;;  %v4661_v12 = vld [vmem:[%s6292_s3 + $0x140] sm:$0xff]  }
 0x136   : > { %v3906_v23 = vpop.f32.mrb[29].mxu0  ;;  %4297 = vmatprep.subr.bf16.mxu1 %v4661_v12 }
 0x137   : > { %v3981_v34 = vpop.f32.mrb[28].mxu1  ;;  %v3907_v49 = vadd.f32 %v3906_v23, %v3905_v58  ;;  %v3908_v42 = vpop.f32.mrb[30].mxu0 }
 0x138   : > { %v3982_v36 = vpop.f32.mrb[29].mxu1  ;;  %v3909_v20 = vpop.f32.mrb[31].mxu0 }
 0x139   : > { %v3983_v30 = vadd.f32 %v3982_v36, %v3981_v34  ;;  %v3984_v33 = vpop.f32.mrb[30].mxu1  ;;  %v1406_v45 = vadd.f32 %v3907_v49, %v5423_v14  ;;  %v3910_v47 = vadd.f32 %v3909_v20, %v3908_v42 }
 0x13a   : > { %v3985_v40 = vpop.f32.mrb[31].mxu1 }
 0x13b   : > { %v3986_v18 = vadd.f32 %v3985_v40, %v3984_v33  ;;  %v1409_v51 = vadd.f32 %v3910_v47, %v5423_v14  ;;  %v5547_v53 = vadd.f32 %v3983_v30, %v1406_v45 }
 0x13d   : > { %v5549_v61 = vadd.f32 %v3986_v18, %v1409_v51  ;;  %v3911_v62 = vpop.f32.mrb[32].mxu0 }
 0x13e   : > { %v3912_v63 = vpop.f32.mrb[33].mxu0 }
 0x13f   : > { %v3987_v48 = vpop.f32.mrb[32].mxu1  ;;  %v3913_v1 = vadd.f32 %v3912_v63, %v3911_v62  ;;  %v3914_v4 = vpop.f32.mrb[34].mxu0 }
 0x140   : > { %v3988_v50 = vpop.f32.mrb[33].mxu1  ;;  %v3915_v5 = vpop.f32.mrb[35].mxu0 }
 0x141   : > { %v3989_v56 = vadd.f32 %v3988_v50, %v3987_v48  ;;  %v3990_v59 = vpop.f32.mrb[34].mxu1  ;;  %v1414_v0 = vadd.f32 %v3913_v1, %v5423_v14  ;;  %v3916_v31 = vadd.f32 %v3915_v5, %v3914_v4 }
 0x142   : > { %v3991_v39 = vpop.f32.mrb[35].mxu1 }
 0x143   : > { %v3992_v57 = vadd.f32 %v3991_v39, %v3990_v59  ;;  %v1417_v6 = vadd.f32 %v3916_v31, %v5423_v14  ;;  %v5553_v7 = vadd.f32 %v3989_v56, %v1414_v0 }
 0x145   : > { %v5558_v15 = vadd.f32 %v3992_v57, %v1417_v6  ;;  %v3917_v16 = vpop.f32.mrb[36].mxu0 }
 0x146   : > { %v3918_v21 = vpop.f32.mrb[37].mxu0 }
 0x147   : > { %v3993_v60 = vpop.f32.mrb[36].mxu1  ;;  %v3919_v22 = vadd.f32 %v3918_v21, %v3917_v16  ;;  %v3920_v25 = vpop.f32.mrb[38].mxu0 }
 0x148   : > { %v3994_v3 = vpop.f32.mrb[37].mxu1  ;;  %v3921_v27 = vpop.f32.mrb[39].mxu0 }
 0x149   : > { %v3995_v8 = vadd.f32 %v3994_v3, %v3993_v60  ;;  %v3996_v10 = vpop.f32.mrb[38].mxu1  ;;  %v1422_v28 = vadd.f32 %v3919_v22, %v5423_v14  ;;  %v3922_v34 = vadd.f32 %v3921_v27, %v3920_v25 }
 0x14a   : > { %v3997_v13 = vpop.f32.mrb[39].mxu1 }
 0x14b   : > { %v3998_v19 = vadd.f32 %v3997_v13, %v3996_v10  ;;  %v1425_v43 = vadd.f32 %v3922_v34, %v5423_v14  ;;  %v5562_v44 = vadd.f32 %v3995_v8, %v1422_v28 }
 0x14d   : > { %v5564_v58 = vadd.f32 %v3998_v19, %v1425_v43  ;;  %v4015_v18 = vpop.f32.mrb[40].mxu0 }
 0x14e   : > { %v4016_v49 = vpop.f32.mrb[41].mxu0 }
 0x14f   : > { %v4091_v35 = vpop.f32.mrb[40].mxu1  ;;  %v4017_v42 = vadd.f32 %v4016_v49, %v4015_v18  ;;  %v4018_v20 = vpop.f32.mrb[42].mxu0 }
 0x150   : > { %v4092_v36 = vpop.f32.mrb[41].mxu1  ;;  %v4019_v45 = vpop.f32.mrb[43].mxu0 }
 0x151   : > { %v4093_v30 = vadd.f32 %v4092_v36, %v4091_v35  ;;  %v4094_v33 = vpop.f32.mrb[42].mxu1  ;;  %v1576_v47 = vadd.f32 %v4017_v42, %v5427_v32  ;;  %v4020_v48 = vadd.f32 %v4019_v45, %v4018_v20  ;;  %v4669_v32 = vld [vmem:[%s6292_s3 + $0x1c0] sm:$0xff]  }
 0x152   : > { %v4095_v40 = vpop.f32.mrb[43].mxu1  ;;  %4361 = vmatprep.subr.bf16.mxu0 %v4669_v32 }
 0x153   : > { %v4096_v23 = vadd.f32 %v4095_v40, %v4094_v33  ;;  %v1579_v14 = vadd.f32 %v4020_v48, %v5429_v37  ;;  %v5568_v39 = vadd.f32 %v4093_v30, %v1576_v47 }
 0x155   : > { %v4021_v57 = vpop.f32.mrb[44].mxu0  ;;  %v5570_v1 = vadd.f32 %v4096_v23, %v1579_v14 }
 0x156   : > { %v4022_v4 = vpop.f32.mrb[45].mxu0 }
 0x157   : > { %v4097_v50 = vpop.f32.mrb[44].mxu1  ;;  %v4023_v5 = vadd.f32 %v4022_v4, %v4021_v57  ;;  %v4024_v0 = vpop.f32.mrb[46].mxu0 }
 0x158   : > { %v4098_v51 = vpop.f32.mrb[45].mxu1  ;;  %v4025_v31 = vpop.f32.mrb[47].mxu0 }
 0x159   : > { %v4099_v56 = vadd.f32 %v4098_v51, %v4097_v50  ;;  %v4100_v59 = vpop.f32.mrb[46].mxu1  ;;  %v1584_v60 = vadd.f32 %v4023_v5, %v5439_v29  ;;  %v4026_v37 = vadd.f32 %v4025_v31, %v4024_v0 }
 0x15a   : > { %v4101_v62 = vpop.f32.mrb[47].mxu1 }
 0x15b   : > { %v4102_v63 = vadd.f32 %v4101_v62, %v4100_v59  ;;  %v1587_v8 = vadd.f32 %v4026_v37, %v5441_v17  ;;  %v5577_v13 = vadd.f32 %v4099_v56, %v1584_v60 }
 0x15d   : > { %v4027_v19 = vpop.f32.mrb[48].mxu0  ;;  %v5579_v22 = vadd.f32 %v4102_v63, %v1587_v8 }
 0x15e   : > { %v4028_v25 = vpop.f32.mrb[49].mxu0 }
 0x15f   : > { %v4103_v3 = vpop.f32.mrb[48].mxu1  ;;  %v4029_v27 = vadd.f32 %v4028_v25, %v4027_v19  ;;  %v4030_v28 = vpop.f32.mrb[50].mxu0 }
 0x160   : > { %v4104_v6 = vpop.f32.mrb[49].mxu1  ;;  %v4031_v34 = vpop.f32.mrb[51].mxu0 }
 0x161   : > { %v4105_v10 = vadd.f32 %v4104_v6, %v4103_v3  ;;  %v4106_v12 = vpop.f32.mrb[50].mxu1  ;;  %v1592_v29 = vadd.f32 %v4029_v27, %v5454_v2  ;;  %v4032_v35 = vadd.f32 %v4031_v34, %v4030_v28 }
 0x162   : > { %v4107_v16 = vpop.f32.mrb[51].mxu1 }
 0x163   : > { %v4108_v21 = vadd.f32 %v4107_v16, %v4106_v12  ;;  %v1595_v17 = vadd.f32 %v4032_v35, %v5462_v26  ;;  %v5583_v40 = vadd.f32 %v4105_v10, %v1592_v29 }
 0x165   : > { %v4033_v23 = vpop.f32.mrb[52].mxu0  ;;  %v5585_v42 = vadd.f32 %v4108_v21, %v1595_v17 }
 0x166   : > { %v4034_v20 = vpop.f32.mrb[53].mxu0 }
 0x167   : > { %v4109_v36 = vpop.f32.mrb[52].mxu1  ;;  %v4035_v45 = vadd.f32 %v4034_v20, %v4033_v23  ;;  %v4036_v47 = vpop.f32.mrb[54].mxu0 }
 0x168   : > { %v4110_v43 = vpop.f32.mrb[53].mxu1  ;;  %v4037_v48 = vpop.f32.mrb[55].mxu0 }
 0x169   : > { %v4111_v30 = vadd.f32 %v4110_v43, %v4109_v36  ;;  %v4112_v33 = vpop.f32.mrb[54].mxu1  ;;  %v1600_v2 = vadd.f32 %v4035_v45, %v5475_v24  ;;  %v4038_v50 = vadd.f32 %v4037_v48, %v4036_v47 }
 0x16a   : > { %v4113_v18 = vpop.f32.mrb[55].mxu1 }
 0x16b   : > { %v4114_v49 = vadd.f32 %v4113_v18, %v4112_v33  ;;  %v1603_v26 = vadd.f32 %v4038_v50, %v5486_v38  ;;  %v5589_v62 = vadd.f32 %v4111_v30, %v1600_v2 }
 0x16d   : > { %v4039_v63 = vpop.f32.mrb[56].mxu0  ;;  %v5591_v5 = vadd.f32 %v4114_v49, %v1603_v26 }
 0x16e   : > { %v4040_v0 = vpop.f32.mrb[57].mxu0 }
 0x16f   : > { %v4115_v51 = vpop.f32.mrb[56].mxu1  ;;  %v4041_v31 = vadd.f32 %v4040_v0, %v4039_v63  ;;  %v4042_v32 = vpop.f32.mrb[58].mxu0 }
 0x170   : > { %v4116_v14 = vpop.f32.mrb[57].mxu1  ;;  %v4043_v60 = vpop.f32.mrb[59].mxu0 }
 0x171   : > { %v4117_v56 = vadd.f32 %v4116_v14, %v4115_v51  ;;  %v4118_v59 = vpop.f32.mrb[58].mxu1  ;;  %v1608_v24 = vadd.f32 %v4041_v31, %v5499_v46  ;;  %v4044_v37 = vadd.f32 %v4043_v60, %v4042_v32 }
 0x172   : > { %v4119_v57 = vpop.f32.mrb[59].mxu1 }
 0x173   : > { %v4120_v4 = vadd.f32 %v4119_v57, %v4118_v59  ;;  %v1611_v38 = vadd.f32 %v4044_v37, %v5504_v41  ;;  %v5595_v12 = vadd.f32 %v4117_v56, %v1608_v24 }
 0x175   : > { %v4045_v19 = vpop.f32.mrb[60].mxu0  ;;  %v5597_v25 = vadd.f32 %v4120_v4, %v1611_v38 }
 0x176   : > { %v4046_v27 = vpop.f32.mrb[61].mxu0 }
 0x177   : > { %v4121_v3 = vpop.f32.mrb[60].mxu1  ;;  %v4047_v28 = vadd.f32 %v4046_v27, %v4045_v19  ;;  %v4048_v34 = vpop.f32.mrb[62].mxu0 }
 0x178   : > { %v4122_v6 = vpop.f32.mrb[61].mxu1  ;;  %v4049_v29 = vpop.f32.mrb[63].mxu0 }
 0x179   : > { %v4123_v8 = vadd.f32 %v4122_v6, %v4121_v3  ;;  %v4124_v10 = vpop.f32.mrb[62].mxu1  ;;  %v1616_v46 = vadd.f32 %v4047_v28, %v5517_v54  ;;  %v4050_v35 = vadd.f32 %v4049_v29, %v4048_v34 }
 0x17a   : > { %v4125_v16 = vpop.f32.mrb[63].mxu1 }
 0x17b   : > { %v4126_v21 = vadd.f32 %v4125_v16, %v4124_v10  ;;  %v1619_v41 = vadd.f32 %v4050_v35, %v5522_v9  ;;  %v5601_v33 = vadd.f32 %v4123_v8, %v1616_v46 }
 0x17d   : > { %v4051_v23 = vpop.f32.mrb[64].mxu0  ;;  %v5603_v20 = vadd.f32 %v4126_v21, %v1619_v41 }
 0x17e   : > { %v4052_v45 = vpop.f32.mrb[65].mxu0 }
 0x17f   : > { %v4127_v36 = vpop.f32.mrb[64].mxu1  ;;  %v4053_v47 = vadd.f32 %v4052_v45, %v4051_v23  ;;  %v4054_v48 = vpop.f32.mrb[66].mxu0 }
 0x180   : > { %v4128_v43 = vpop.f32.mrb[65].mxu1  ;;  %v4055_v2 = vpop.f32.mrb[67].mxu0 }
 0x181   : > { %v4129_v17 = vadd.f32 %v4128_v43, %v4127_v36  ;;  %v4130_v30 = vpop.f32.mrb[66].mxu1  ;;  %v1624_v54 = vadd.f32 %v4053_v47, %v5541_v11  ;;  %v4056_v50 = vadd.f32 %v4055_v2, %v4054_v48  ;;  %v5624_v48 = vstv %s3687_s25 }
 0x182   : > { %v4131_v18 = vpop.f32.mrb[67].mxu1  ;;  %vm1911_vm9 = vcmp.ge.s32.totalorder %v5624_v48, 0  ;;  %vm1921_vm10 = vcmp.lt.s32.totalorder %v5624_v48, 16 }
 0x183   : > { %v4132_v49 = vadd.f32 %v4131_v18, %v4130_v30  ;;  %v1627_v9 = vadd.f32 %v4056_v50, %v5543_v55  ;;  %v5607_v59 = vadd.f32 %v4129_v17, %v1624_v54  ;;  %vm1931_vm12 = vmand %vm1911_vm9, %vm1921_vm10 }
 0x185   : > { %v4057_v63 = vpop.f32.mrb[68].mxu0  ;;  %v5609_v0 = vadd.f32 %v4132_v49, %v1627_v9 }
 0x186   : > { %v4058_v31 = vpop.f32.mrb[69].mxu0 }
 0x187   : > { %v4133_v51 = vpop.f32.mrb[68].mxu1  ;;  %v4059_v32 = vadd.f32 %v4058_v31, %v4057_v63  ;;  %v4060_v60 = vpop.f32.mrb[70].mxu0 }
 0x188   : > { %v4134_v14 = vpop.f32.mrb[69].mxu1  ;;  %v4061_v24 = vpop.f32.mrb[71].mxu0 }
 0x189   : > { %v4135_v26 = vadd.f32 %v4134_v14, %v4133_v51  ;;  %v4136_v56 = vpop.f32.mrb[70].mxu1  ;;  %v1632_v11 = vadd.f32 %v4059_v32, %v5547_v53  ;;  %v4062_v37 = vadd.f32 %v4061_v24, %v4060_v60  ;;  %v1904_v60 = vadd.s32 3, %v5624_v48 }
 0x18a   : > { %v4137_v57 = vpop.f32.mrb[71].mxu1 }
 0x18b   : > { %v4138_v4 = vadd.f32 %v4137_v57, %v4136_v56  ;;  %v1635_v55 = vadd.f32 %v4062_v37, %v5549_v61  ;;  %v5613_v10 = vadd.f32 %v4135_v26, %v1632_v11  ;;  %v1903_v37 = vadd.s32 2, %v5624_v48 }
 0x18c   : > { %vm1914_vm13 = vcmp.ge.s32.totalorder %v1904_v60, 0  ;;  %vm1924_vm14 = vcmp.lt.s32.totalorder %v1904_v60, 16 }
 0x18d   : > { %v4063_v19 = vpop.f32.mrb[72].mxu0  ;;  %v5615_v27 = vadd.f32 %v4138_v4, %v1635_v55  ;;  %vm1913_vm15 = vcmp.ge.s32.totalorder %v1903_v37, 0  ;;  %vm1923_vm0 = vcmp.lt.s32.totalorder %v1903_v37, 16 }
 0x18e   : > { %v4064_v28 = vpop.f32.mrb[73].mxu0 }
 0x18f   : > { %v4139_v3 = vpop.f32.mrb[72].mxu1  ;;  %v4065_v34 = vadd.f32 %v4064_v28, %v4063_v19  ;;  %v4066_v29 = vpop.f32.mrb[74].mxu0 }
 0x190   : > { %v4140_v6 = vpop.f32.mrb[73].mxu1  ;;  %v4067_v46 = vpop.f32.mrb[75].mxu0 }
 0x191   : > { %v4141_v38 = vadd.f32 %v4140_v6, %v4139_v3  ;;  %v4142_v8 = vpop.f32.mrb[74].mxu1  ;;  %v1640_v53 = vadd.f32 %v4065_v34, %v5553_v7  ;;  %v4068_v35 = vadd.f32 %v4067_v46, %v4066_v29  ;;  %v5642_v3 = vadd.s32 5, %v5624_v48 }
 0x192   : > { %v4143_v16 = vpop.f32.mrb[75].mxu1 }
 0x193   : > { %v4144_v21 = vadd.f32 %v4143_v16, %v4142_v8  ;;  %v1643_v61 = vadd.f32 %v4068_v35, %v5558_v15  ;;  %v5619_v30 = vadd.f32 %v4141_v38, %v1640_v53  ;;  %v1902_v15 = vadd.s32 1, %v5624_v48 }
 0x194   : > { %vm1916_vm1 = vcmp.ge.s32.totalorder %v5642_v3, 0  ;;  %vm1926_vm2 = vcmp.lt.s32.totalorder %v5642_v3, 16 }
 0x195   : > { %v4069_v23 = vpop.f32.mrb[76].mxu0  ;;  %v5622_v45 = vadd.f32 %v4144_v21, %v1643_v61  ;;  %vm1912_vm7 = vcmp.ge.s32.totalorder %v1902_v15, 0  ;;  %vm1922_vm8 = vcmp.lt.s32.totalorder %v1902_v15, 16 }
 0x196   : > { %v4070_v47 = vpop.f32.mrb[77].mxu0  ;;  %vm1932_vm11 = vmand %vm1912_vm7, %vm1922_vm8 }
 0x197   : > { %v4145_v36 = vpop.f32.mrb[76].mxu1  ;;  %v4071_v2 = vadd.f32 %v4070_v47, %v4069_v23  ;;  %v4072_v7 = vpop.f32.mrb[78].mxu0  ;;  %vm1934_vm7 = vmand %vm1914_vm13, %vm1924_vm14 }
 0x198   : > { %v4146_v43 = vpop.f32.mrb[77].mxu1  ;;  %v4073_v54 = vpop.f32.mrb[79].mxu0  ;;  %vm1933_vm8 = vmand %vm1913_vm15, %vm1923_vm0 }
 0x199   : > { %v4147_v41 = vadd.f32 %v4146_v43, %v4145_v36  ;;  %v4148_v17 = vpop.f32.mrb[78].mxu1  ;;  %v1648_v50 = vadd.f32 %v4071_v2, %v5562_v44  ;;  %v4074_v51 = vadd.f32 %v4073_v54, %v4072_v7  ;;  %v5663_v2 = vadd.s32 6, %v5624_v48  ;;  %vm5703_vm14 = vmand %vm1916_vm1, %vm1926_vm2 }
 0x19a   : > { %v4149_v18 = vpop.f32.mrb[79].mxu1 }
 0x19b   : > { %v4150_v49 = vadd.f32 %v4149_v18, %v4148_v17  ;;  %v1651_v14 = vadd.f32 %v4074_v51, %v5564_v58  ;;  %v5629_v9 = vadd.f32 %v4147_v41, %v1648_v50  ;;  %vm1927_vm13 = vcmp.lt.s32.totalorder %v5663_v2, 16 }
 0x19d   : > { %v4459_v26 = vpop.f32.mrb[80].mxu0  ;;  %v5631_v56 = vadd.f32 %v4150_v49, %v1651_v14  ;;  %v5659_v49 = vadd.s32 7, %v5624_v48 }
 0x19e   : > { %v1810_v57 = vadd.f32 %v4459_v26, %v5577_v13  ;;  %v1801_v63 = vpop.f32.mrb[81].mxu0 }
 0x19f   : > { %v1802_v4 = vadd.f32 %v1801_v63, %v5568_v39  ;;  %v4460_v44 = vpop.f32.mrb[82].mxu0  ;;  %vm1918_vm10 = vcmp.ge.s32.totalorder %v5659_v49, 0 }
 0x1a0   : > { %v1882_v31 = vmax.f32 %v1810_v57, 0.0  ;;  %v1813_v58 = vadd.f32 %v4460_v44, %v5579_v22  ;;  %v1804_v32 = vpop.f32.mrb[83].mxu0  ;;  %v5645_v22 = vadd.s32 4, %v5624_v48 }
 0x1a1   : > { %v1880_v24 = vmax.f32 %v1802_v4, 0.0  ;;  %v1805_v13 = vadd.f32 %v1804_v32, %v5570_v1 }
 0x1a2   : > { %v1883_v11 = vmax.f32 %v1813_v58, 0.0  ;;  %v1963_v6 = vsel %vm1932_vm11, %v1882_v31, 0.0  ;;  %vm1915_vm6 = vcmp.ge.s32.totalorder %v5645_v22, 0  ;;  %vm1925_vm9 = vcmp.lt.s32.totalorder %v5645_v22, 16  ;;  %v4673_v22 = vld [vmem:[%s6292_s3 + $0x188] sm:$0xff]  }
 0x1a3   : > { %v1881_v39 = vmax.f32 %v1805_v13, 0.0  ;;  %v1961_v38 = vsel %vm1931_vm12, %v1880_v24, 0.0  ;;  %vm5718_vm15 = vmand %vm1915_vm6, %vm1925_vm9 }
 0x1a4   : > { %v1964_v55 = vsel %vm1932_vm11, %v1883_v11, 0.0  ;;  %vm1928_vm11 = vcmp.lt.s32.totalorder %v5659_v49, 16  ;;  %v4668_v49 = vld [vmem:[%s6292_s3 + $0x118] sm:$0xff]  }
 0x1a5   : > { %v1982_v8 = vpack.c.bf16 %v1964_v55, %v1963_v6  ;;  %v1962_v16 = vsel %vm1931_vm12, %v1881_v39, 0.0  ;;  %v4463_v19 = vpop.f32.mrb[84].mxu0  ;;  %vm1917_vm12 = vcmp.ge.s32.totalorder %v5663_v2, 0  ;;  %v5694_v55 = vadd.s32 9, %v5624_v48  ;;  %vm5777_vm6 = vmand %vm1918_vm10, %vm1928_vm11 }
 0x1a6   : > { %v1981_v1 = vpack.c.bf16 %v1962_v16, %v1961_v38  ;;  %v1826_v21 = vadd.f32 %v4463_v19, %v5589_v62  ;;  %v1817_v28 = vpop.f32.mrb[85].mxu0  ;;  %v5710_v19 = vadd.s32 8, %v5624_v48 }
 0x1a7   : > { %v1999_v34 = vshrl.u32 %v1982_v8, 16  ;;  %v1818_v29 = vadd.f32 %v1817_v28, %v5583_v40  ;;  %v4464_v46 = vpop.f32.mrb[86].mxu0  ;;  %v2002_v62 = vshll.u32 %v1982_v8, 16  ;;  %vm1920_vm0 = vcmp.ge.s32.totalorder %v5694_v55, 0 }
 0x1a8   : > { %v1992_v53 = vshrl.u32 %v1981_v1, 16  ;;  %v1886_v35 = vmax.f32 %v1826_v21, 0.0  ;;  %v1829_v36 = vadd.f32 %v4464_v46, %v5591_v5  ;;  %v1820_v43 = vpop.f32.mrb[87].mxu0  ;;  %v1995_v18 = vshll.u32 %v1981_v1, 16 }
 0x1a9   : > { %v2001_v61 = vrot.slane %v1999_v34, 7  ;;  %v1884_v41 = vmax.f32 %v1818_v29, 0.0  ;;  %v1821_v40 = vadd.f32 %v1820_v43, %v5585_v42  ;;  %vm1930_vm1 = vcmp.lt.s32.totalorder %v5694_v55, 16  ;;  %v4666_v55 = vld [vmem:[%s6292_s3 + $0x110] sm:$0xff]  }
 0x1aa   : > { %v1994_v17 = vrot.slane %v1992_v53, 7  ;;  %v1887_v23 = vmax.f32 %v1829_v36, 0.0  ;;  %v1967_v54 = vsel %vm1934_vm7, %v1886_v35, 0.0  ;;  %vm1919_vm2 = vcmp.ge.s32.totalorder %v5710_v19, 0  ;;  %vm5845_vm9 = vmand %vm1920_vm0, %vm1930_vm1 }
 0x1ab   : > { %v1885_v5 = vmax.f32 %v1821_v40, 0.0  ;;  %v2004_v47 = vor.u32 %v2002_v62, %v2001_v61  ;;  %v1965_v51 = vsel %vm1933_vm8, %v1884_v41, 0.0 }
 0x1ac   : > { %v1997_v7 = vor.u32 %v1995_v18, %v1994_v17  ;;  %v5667_v42 = vsel %vm4941_vm3, %v1994_v17, 0  ;;  %v1968_v50 = vsel %vm1934_vm7, %v1887_v23, 0.0  ;;  %vm1929_vm7 = vcmp.lt.s32.totalorder %v5710_v19, 16 }
 0x1ad   : > { %v5669_v15 = vpack.c.bf16 %v1968_v50, %v1967_v54  ;;  %v1966_v14 = vsel %vm1933_vm8, %v1885_v5, 0.0  ;;  %v4467_v26 = vpop.f32.mrb[88].mxu0  ;;  %v5673_v57 = vsel %vm4941_vm3, 0, %v2004_v47  ;;  %v2222_v58 = vrot.slane %v5667_v42, 1  ;;  %vm5792_vm8 = vmand %vm1917_vm12, %vm1927_vm13 }
 0x1ae   : > { %v5677_v63 = vsel %vm4941_vm3, 0, %v1997_v7  ;;  %v1983_v4 = vpack.c.bf16 %v1966_v14, %v1965_v51  ;;  %v1842_v44 = vadd.f32 %v4467_v26, %v5601_v33  ;;  %v1833_v31 = vpop.f32.mrb[89].mxu0  ;;  %3003 = vmatprep.mubr.bf16.mxu0 %v5673_v57  ;;  %v4670_v33 = vld [vmem:[%s6292_s3 + $0x180] sm:$0xff]   ;;  %v2109_v46 = vshll.u32 %v5667_v42, 16  ;;  %vm5864_vm10 = vmand %vm1919_vm2, %vm1929_vm7 }
 0x1af   : > { %v2013_v32 = vshrl.u32 %v5669_v15, 16  ;;  %v1834_v60 = vadd.f32 %v1833_v31, %v5595_v12  ;;  %v4468_v24 = vpop.f32.mrb[90].mxu0  ;;  %v2221_v13 = vrot.slane %v5677_v63, 1  ;;  %v4671_v12 = vld [vmem:[%s6292_s3 + $0x1c8] sm:$0xff]   ;;  %v2104_v29 = vshll.u32 %v5677_v63, 16 }
 0x1b0   : > { %v2006_v11 = vshrl.u32 %v1983_v4, 16  ;;  %v1890_v37 = vmax.f32 %v1842_v44, 0.0  ;;  %v1845_v39 = vadd.f32 %v4468_v24, %v5603_v20  ;;  %v1836_v6 = vpop.f32.mrb[91].mxu0  ;;  %v2009_v21 = vshll.u32 %v1983_v4, 16 }
 0x1b1   : > { %v1888_v8 = vmax.f32 %v1834_v60, 0.0  ;;  %v1837_v16 = vadd.f32 %v1836_v6, %v5597_v25  ;;  %v2223_v20 = vsel %vm653_vm4, %v2221_v13, %v2222_v58  ;;  %v5724_v25 = vsel %vm4941_vm3, %v2001_v61, 0  ;;  %v4675_v61 = vld [vmem:[%s6292_s3 + $0x1d0] sm:$0xff]   ;;  %v4663_v13 = vld [vmem:[%s6292_s3 + $0x148] sm:$0xff]  }
 0x1b2   : > { %v5712_v1 = vrot.slane %v2006_v11, 7  ;;  %v1891_v28 = vmax.f32 %v1845_v39, 0.0  ;;  %3004 = vmatmul.mubr.bf16.vlgmr.msra.gmra.mrb[100].mxu0 %v2223_v20  ;;  %v5726_v34 = vrot.slane %v2013_v32, 7  ;;  %v1971_v35 = vsel %vm5703_vm14, %v1890_v37, 0.0  ;;  %v4677_v32 = vld [vmem:[%s6292_s3 + $0x1d8] sm:$0xff]  }
 0x1b3   : > { %v1889_v48 = vmax.f32 %v1837_v16, 0.0  ;;  %4362 = vmatpush3.bf16.msra.mxu0 %v4670_v33  ;;  %v2102_v43 = vshrl.u32 %v5677_v63, 16  ;;  %v1969_v62 = vsel %vm5718_vm15, %v1888_v8, 0.0  ;;  %v2106_v18 = vrot.slane %v2104_v29, 1 }
 0x1b4   : > { %v2011_v53 = vor.u32 %v2009_v21, %v5712_v1  ;;  %v1972_v36 = vsel %vm5703_vm14, %v1891_v28, 0.0  ;;  %4363 = vmatprep.subr.bf16.mxu0 %v4671_v12  ;;  %v2116_v42 = vshll.u32 %v5673_v57, 16  ;;  %v2111_v51 = vrot.slane %v2109_v46, 1  ;;  %v4664_v21 = vld [vmem:[%s6292_s3 + $0x108] sm:$0xff]   ;;  %v4679_v46 = vld [vmem:[%s6292_s3 + $0x198] sm:$0xff]  }
 0x1b5   : > { %v5746_v41 = vpack.c.bf16 %v1972_v36, %v1971_v35  ;;  %v1970_v40 = vsel %vm5718_vm15, %v1889_v48, 0.0  ;;  %v4471_v17 = vpop.f32.mrb[92].mxu0  ;;  %v2107_v50 = vor.u32 %v2106_v18, %v2102_v43  ;;  %v2121_v26 = vshll.u32 %v5724_v25, 16 }
 0x1b6   : > { %v5750_v23 = vpack.c.bf16 %v1970_v40, %v1969_v62  ;;  %v1858_v5 = vadd.f32 %v4471_v17, %v5613_v10  ;;  %v1849_v47 = vpop.f32.mrb[93].mxu0  ;;  %v5755_v7 = vsel %vm4941_vm3, 0, %v2011_v53  ;;  %v4676_v10 = vld [vmem:[%s6292_s3 + $0x190] sm:$0xff]   ;;  %v2016_v4 = vshll.u32 %v5669_v15, 16 }
 0x1b7   : > { %v1850_v54 = vadd.f32 %v1849_v47, %v5607_v59  ;;  %v4472_v14 = vpop.f32.mrb[94].mxu0  ;;  %3011 = vmatprep.mubr.bf16.mxu0 %v5755_v7  ;;  %4364 = vmatpush3.bf16.msra.mxu0 %v4673_v22  ;;  %v4662_v59 = vld [vmem:[%s6292_s3 + $0x100] sm:$0xff]   ;;  %v2112_v60 = vsel %vm502_vm5, %v2107_v50, %v2111_v51  ;;  %v2118_v37 = vrot.slane %v2116_v42, 1  ;;  %v2123_v12 = vrot.slane %v2121_v26, 1 }
 0x1b8   : > { %v1894_v44 = vmax.f32 %v1858_v5, 0.0  ;;  %v1861_v31 = vadd.f32 %v4472_v14, %v5615_v27  ;;  %v1852_v58 = vpop.f32.mrb[95].mxu0  ;;  %4365 = vmatprep.subr.bf16.mxu0 %v4675_v61  ;;  %v2018_v33 = vor.u32 %v2016_v4, %v5726_v34  ;;  %2906 = vmatprep.mubr.bf16.mxu1 %v2112_v60  ;;  %v2020_v39 = vshrl.u32 %v5750_v23, 16  ;;  %v4681_v61 = vld [vmem:[%s6292_s3 + $0x1e0] sm:$0xff]   ;;  %v4667_v14 = vld [vmem:[%s6292_s3 + $0x158] sm:$0xff]  }
 0x1b9   : > { %v1892_v27 = vmax.f32 %v1850_v54, 0.0  ;;  %v1853_v24 = vadd.f32 %v1852_v58, %v5609_v0  ;;  %v2114_v0 = vshrl.u32 %v5673_v57, 16  ;;  %2907 = vmatmul.mubr.bf16.vlgmr.msra.gmra.mrb[80].mxu1 %v5677_v63  ;;  %v2224_v38 = vrot.slane %v5673_v57, 1 }
 0x1ba   : > { %v1895_v11 = vmax.f32 %v1861_v31, 0.0  ;;  %v1975_v2 = vsel %vm5777_vm6, %v1894_v44, 0.0  ;;  %4298 = vmatpush3.bf16.msra.mxu1 %v4662_v59  ;;  %v2225_v20 = vrot.slane %v5724_v25, 1  ;;  %v2027_v63 = vshrl.u32 %v5746_v41, 16  ;;  %v4665_v25 = vld [vmem:[%s6292_s3 + $0x150] sm:$0xff]  }
 0x1bb   : > { %v1893_v6 = vmax.f32 %v1853_v24, 0.0  ;;  %4366 = vmatpush3.bf16.msra.mxu0 %v4676_v10  ;;  %v2119_v16 = vor.u32 %v2118_v37, %v2114_v0  ;;  %v1973_v3 = vsel %vm5792_vm8, %v1892_v27, 0.0  ;;  %4299 = vmatprep.subr.bf16.mxu1 %v4663_v13  ;;  %v5833_v62 = vrot.slane %v2020_v39, 7  ;;  %v4672_v37 = vld [vmem:[%s6292_s3 + $0x160] sm:$0xff]   ;;  %v4685_v39 = vld [vmem:[%s6292_s3 + $0x1a8] sm:$0xff]  }
 0x1bc   : > { %v1976_v8 = vsel %vm5777_vm6, %v1895_v11, 0.0  ;;  %4367 = vmatprep.subr.bf16.mxu0 %v4677_v32  ;;  %v5827_v35 = vsel %vm653_vm4, %v2224_v38, %v2225_v20  ;;  %v5839_v40 = vsel %vm4941_vm3, 0, %v2018_v33  ;;  %v2093_v5 = vsel %vm4941_vm3, %v5712_v1, 0  ;;  %v4691_v1 = vld [vmem:[%s6292_s3 + $0x1b8] sm:$0xff]  }
 0x1bd   : > { %v5811_v28 = vpack.c.bf16 %v1976_v8, %v1975_v2  ;;  %v1974_v48 = vsel %vm5792_vm8, %v1893_v6, 0.0  ;;  %v4475_v29 = vpop.f32.mrb[96].mxu0  ;;  %v5824_v53 = vsel %vm502_vm5, %v2119_v16, %v2123_v12  ;;  %3012 = vmatmul.mubr.bf16.gmra.mrb[104].mxu0 %v5827_v35  ;;  %v2030_v47 = vshll.u32 %v5746_v41, 16 }
 0x1be   : > { %v5821_v22 = vpack.c.bf16 %v1974_v48, %v1973_v3  ;;  %v1874_v36 = vadd.f32 %v4475_v29, %v5629_v9  ;;  %v1865_v43 = vpop.f32.mrb[97].mxu0  ;;  %2914 = vmatprep.mubr.bf16.mxu1 %v5824_v53  ;;  %3019 = vmatprep.mubr.bf16.mxu0 %v5839_v40  ;;  %v5876_v26 = vrot.slane %v2027_v63, 7  ;;  %v2133_v4 = vshll.u32 %v2093_v5, 16  ;;  %v4678_v29 = vld [vmem:[%s6292_s3 + $0x168] sm:$0xff]  }
 0x1bf   : > { %v1866_v17 = vadd.f32 %v1865_v43, %v5619_v30  ;;  %v4476_v18 = vpop.f32.mrb[98].mxu0  ;;  %4300 = vmatpush3.bf16.msra.mxu1 %v4664_v21  ;;  %v2023_v30 = vshll.u32 %v5750_v23, 16  ;;  %4368 = vmatpush3.bf16.msra.mxu0 %v4679_v46  ;;  %v4682_v23 = vld [vmem:[%s6292_s3 + $0x1a0] sm:$0xff]   ;;  %v2126_v58 = vshrl.u32 %v5755_v7, 16  ;;  %v2227_v60 = vrot.slane %v5755_v7, 1 }
 0x1c0   : > { %v1898_v42 = vmax.f32 %v1874_v36, 0.0  ;;  %v1877_v54 = vadd.f32 %v4476_v18, %v5631_v56  ;;  %v1868_v50 = vpop.f32.mrb[99].mxu0  ;;  %v2128_v56 = vshll.u32 %v5755_v7, 16  ;;  %4301 = vmatprep.subr.bf16.mxu1 %v4665_v25  ;;  %4369 = vmatprep.subr.bf16.mxu0 %v4681_v61  ;;  %v2135_v27 = vrot.slane %v2133_v4, 1  ;;  %v4674_v21 = vld [vmem:[%s6292_s3 + $0x120] sm:$0xff]   ;;  %v4688_v25 = vld [vmem:[%s6292_s3 + $0x1b0] sm:$0xff]  }
 0x1c1   : > { %v1896_v51 = vmax.f32 %v1866_v17, 0.0  ;;  %v1869_v41 = vadd.f32 %v1868_v50, %v5622_v45  ;;  %v4683_v45 = vld [vmem:[%s6292_s3 + $0x1e8] sm:$0xff]   ;;  %v2025_v44 = vor.u32 %v2023_v30, %v5833_v62  ;;  %2915 = vmatmul.mubr.bf16.gmra.mrb[84].mxu1 %v5673_v57  ;;  %v2228_v33 = vrot.slane %v2093_v5, 1  ;;  %v4689_v61 = vld [vmem:[%s6292_s3 + $0x1f8] sm:$0xff]  }
 0x1c2   : > { %v1979_v19 = vsel %vm5845_vm9, %v1898_v42, 0.0  ;;  %v1899_v10 = vmax.f32 %v1877_v54, 0.0  ;;  %v2130_v59 = vrot.slane %v2128_v56, 1  ;;  %v2094_v0 = vsel %vm4941_vm3, %v5726_v34, 0  ;;  %v4687_v34 = vld [vmem:[%s6292_s3 + $0x1f0] sm:$0xff]   ;;  %v4680_v50 = vld [vmem:[%s6292_s3 + $0x128] sm:$0xff]  }
 0x1c3   : > { %v1897_v31 = vmax.f32 %v1869_v41, 0.0  ;;  %v1977_v32 = vsel %vm5864_vm10, %v1896_v51, 0.0  ;;  %4302 = vmatpush3.bf16.msra.mxu1 %v4666_v55  ;;  %4370 = vmatpush3.bf16.msra.mxu0 %v4682_v23  ;;  %v2032_v6 = vor.u32 %v2030_v47, %v5876_v26  ;;  %v5914_v38 = vsel %vm653_vm4, %v2227_v60, %v2228_v33  ;;  %v4684_v51 = vld [vmem:[%s6292_s3 + $0x170] sm:$0xff]   ;;  %v4692_v33 = vld [vmem:[%s6292_s3 + $0x138] sm:$0xff]  }
 0x1c4   : > { %v1980_v15 = vsel %vm5845_vm9, %v1899_v10, 0.0  ;;  %v2131_v57 = vor.u32 %v2130_v59, %v2126_v58  ;;  %4303 = vmatprep.subr.bf16.mxu1 %v4667_v14  ;;  %4371 = vmatprep.subr.bf16.mxu0 %v4683_v45  ;;  %v2034_v2 = vshrl.u32 %v5821_v22, 16  ;;  %v5924_v8 = vsel %vm4941_vm3, 0, %v2025_v44  ;;  %v4686_v45 = vld [vmem:[%s6292_s3 + $0x130] sm:$0xff]   ;;  %v4690_v58 = vld [vmem:[%s6292_s3 + $0x178] sm:$0xff]  }
 0x1c5   : > { %v5891_v24 = vpack.c.bf16 %v1980_v15, %v1979_v19  ;;  %v1978_v13 = vsel %vm5864_vm10, %v1897_v31, 0.0  ;;  %3020 = vmatmul.mubr.bf16.gmra.mrb[108].mxu0 %v5914_v38  ;;  %v2140_v16 = vshll.u32 %v5839_v40, 16  ;;  %v2145_v20 = vshll.u32 %v2094_v0, 16 }
 0x1c6   : > { %v5898_v11 = vpack.c.bf16 %v1978_v13, %v1977_v32  ;;  %v5911_v12 = vsel %vm502_vm5, %v2131_v57, %v2135_v27  ;;  %3027 = vmatprep.mubr.bf16.mxu0 %v5924_v8  ;;  %v2138_v63 = vshrl.u32 %v5839_v40, 16  ;;  %v2095_v48 = vsel %vm4941_vm3, %v5833_v62, 0 }
 0x1c7   : > { %2922 = vmatprep.mubr.bf16.mxu1 %v5911_v12  ;;  %4304 = vmatpush3.bf16.msra.mxu1 %v4668_v49  ;;  %v2142_v3 = vrot.slane %v2140_v16, 1  ;;  %v2230_v36 = vrot.slane %v5839_v40, 1  ;;  %v2152_v43 = vshll.u32 %v5924_v8, 16  ;;  %v2036_v62 = vrot.slane %v2034_v2, 7 }
 0x1c8   : > { %4305 = vmatprep.subr.bf16.mxu1 %v4672_v37  ;;  %4372 = vmatpush3.bf16.msra.mxu0 %v4685_v39  ;;  %v2048_v46 = vshrl.u32 %v5898_v11, 16  ;;  %v2147_v17 = vrot.slane %v2145_v20, 1  ;;  %v5950_v18 = vsel %vm4941_vm3, 0, %v2032_v6  ;;  %v2231_v5 = vrot.slane %v2094_v0, 1  ;;  %v4693_v0 = vld [vmem:[%s6292_s3 + $0x200] sm:$0xff]  }
 0x1c9   : > { %2923 = vmatmul.mubr.bf16.gmra.mrb[88].mxu1 %v5755_v7  ;;  %4373 = vmatprep.subr.bf16.mxu0 %v4687_v34  ;;  %v2143_v9 = vor.u32 %v2142_v3, %v2138_v63  ;;  %v2150_v47 = vshrl.u32 %v5924_v8, 16  ;;  %v2154_v42 = vrot.slane %v2152_v43, 1  ;;  %v2157_v54 = vshll.u32 %v2095_v48, 16 }
 0x1ca   : > { %v2037_v55 = vshll.u32 %v5821_v22, 16  ;;  %v2050_v41 = vrot.slane %v2048_v46, 7  ;;  %v5968_v56 = vsel %vm653_vm4, %v2230_v36, %v2231_v5  ;;  %v2164_v14 = vshll.u32 %v5950_v18, 16 }
 0x1cb   : > { %4306 = vmatpush3.bf16.msra.mxu1 %v4674_v21  ;;  %v5958_v30 = vsel %vm502_vm5, %v2143_v9, %v2147_v17  ;;  %v2155_v22 = vor.u32 %v2154_v42, %v2150_v47  ;;  %v2041_v23 = vshrl.u32 %v5811_v28, 16  ;;  %v2051_v10 = vshll.u32 %v5898_v11, 16 }
 0x1cc   : > { %4307 = vmatprep.subr.bf16.mxu1 %v4678_v29  ;;  %4374 = vmatpush3.bf16.msra.mxu0 %v4688_v25  ;;  %v2039_v19 = vor.u32 %v2037_v55, %v2036_v62  ;;  %v2159_v4 = vrot.slane %v2157_v54, 1  ;;  %v2233_v44 = vrot.slane %v5924_v8, 1  ;;  %v2096_v31 = vsel %vm4941_vm3, %v5876_v26, 0 }
 0x1cd   : > { %2930 = vmatprep.mubr.bf16.mxu1 %v5958_v30  ;;  %4375 = vmatprep.subr.bf16.mxu0 %v4689_v61  ;;  %v2166_v32 = vrot.slane %v2164_v14, 1  ;;  %v2053_v15 = vor.u32 %v2051_v10, %v2050_v41  ;;  %v2043_v27 = vrot.slane %v2041_v23, 7  ;;  %v2234_v60 = vrot.slane %v2095_v48, 1 }
 0x1ce   : > { %3028 = vmatmul.mubr.bf16.gmra.mrb[112].mxu0 %v5968_v56  ;;  %v5987_v59 = vsel %vm502_vm5, %v2155_v22, %v2159_v4  ;;  %v5992_v26 = vsel %vm4941_vm3, 0, %v2039_v19  ;;  %v2162_v13 = vshrl.u32 %v5950_v18, 16  ;;  %v2169_v57 = vshll.u32 %v2096_v31, 16  ;;  %v4694_v4 = vld [vmem:[%s6292_s3 + $0x208] sm:$0xff]  }
 0x1cf   : > { %3035 = vmatprep.mubr.bf16.mxu0 %v5950_v18  ;;  %4308 = vmatpush3.bf16.msra.mxu1 %v4680_v50  ;;  %v2044_v49 = vshll.u32 %v5811_v28, 16  ;;  %v6000_v11 = vsel %vm653_vm4, %v2233_v44, %v2234_v60  ;;  %v2176_v39 = vshll.u32 %v5992_v26, 16  ;;  %v6008_v6 = vsel %vm4941_vm3, 0, %v2053_v15 }
 0x1d0   : > { %4309 = vmatprep.subr.bf16.mxu1 %v4684_v51  ;;  %4376 = vmatpush3.bf16.msra.mxu0 %v4691_v1  ;;  %v2167_v37 = vor.u32 %v2166_v32, %v2162_v13  ;;  %v6012_v34 = vsel %vm4941_vm3, %v2050_v41, 0  ;;  %v2171_v2 = vrot.slane %v2169_v57, 1  ;;  %v2097_v16 = vsel %vm4941_vm3, %v2036_v62, 0 }
 0x1d1   : > { %2931 = vmatmul.mubr.bf16.gmra.mrb[92].mxu1 %v5839_v40  ;;  %v2046_v28 = vor.u32 %v2044_v49, %v2043_v27  ;;  %v2268_v20 = vrot.slane %v6008_v6, 1  ;;  %v2269_v21 = vrot.slane %v6012_v34, 1  ;;  %v2236_v3 = vrot.slane %v5950_v18, 1 }
 0x1d2   : > { %2938 = vmatprep.mubr.bf16.mxu1 %v5987_v59  ;;  %v6022_v63 = vsel %vm502_vm5, %v2167_v37, %v2171_v2  ;;  %v2178_v48 = vrot.slane %v2176_v39, 1  ;;  %v2237_v46 = vrot.slane %v2096_v31, 1  ;;  %v2174_v36 = vshrl.u32 %v5992_v26, 16 }
 0x1d3   : > { %4310 = vmatpush3.bf16.msra.mxu1 %v4686_v45  ;;  %v6028_v29 = vsel %vm4941_vm3, 0, %v2046_v28  ;;  %v6031_v25 = vsel %vm653_vm4, %v2268_v20, %v2269_v21  ;;  %v2181_v43 = vshll.u32 %v2097_v16, 16  ;;  %v2098_v5 = vsel %vm4941_vm3, %v2043_v27, 0  ;;  %v4695_v45 = vld [vmem:[%s6292_s3 + $0x210] sm:$0xff]   ;;  %v6136_v21 = vld [vmem:[%s6293_s4] ss:$0 sm:$0xff] }
 0x1d4   : > { %4311 = vmatprep.subr.bf16.mxu1 %v4690_v58  ;;  %v6035_v61 = vsel %vm653_vm4, %v2236_v3, %v2237_v46  ;;  %v2179_v62 = vor.u32 %v2178_v48, %v2174_v36  ;;  %v2188_v9 = vshll.u32 %v6028_v29, 16  ;;  %v2239_v42 = vrot.slane %v5992_v26, 1 }
 0x1d5   : > { %v2183_v17 = vrot.slane %v2181_v43, 1  ;;  %v2240_v50 = vrot.slane %v2097_v16, 1  ;;  %v2186_v55 = vshrl.u32 %v6028_v29, 16  ;;  %v2193_v51 = vshll.u32 %v2098_v5, 16 }
 0x1d6   : > { %3036 = vmatmul.mubr.bf16.gmra.mrb[116].mxu0 %v6000_v11  ;;  %v2190_v54 = vrot.slane %v2188_v9, 1  ;;  %v2242_v23 = vrot.slane %v6028_v29, 1  ;;  %v2243_v19 = vrot.slane %v2098_v5, 1  ;;  %v2058_v44 = vshll.u32 %v5891_v24, 16 }
 0x1d7   : > { %3043 = vmatprep.mubr.bf16.mxu0 %v5992_v26  ;;  %4312 = vmatpush3.bf16.msra.mxu1 %v4692_v33  ;;  %v6044_v47 = vsel %vm502_vm5, %v2179_v62, %v2183_v17  ;;  %v6050_v1 = vsel %vm653_vm4, %v2239_v42, %v2240_v50  ;;  %v2195_v22 = vrot.slane %v2193_v51, 1  ;;  %v2256_v31 = vshll.u32 %v6008_v6, 16 }
 0x1d8   : > { %4477 = vmatprep.subr.bf16.mxu1 %v4693_v0  ;;  %v2191_v41 = vor.u32 %v2190_v54, %v2186_v55  ;;  %v6061_v10 = vsel %vm653_vm4, %v2242_v23, %v2243_v19 }
 0x1d9   : > { %2939 = vmatmul.mubr.bf16.gmra.mrb[96].mxu1 %v5924_v8 }
 0x1da   : > { %2946 = vmatprep.mubr.bf16.mxu1 %v6022_v63  ;;  %v6056_v14 = vsel %vm502_vm5, %v2191_v41, %v2195_v22 }
 0x1de   : > { %3044 = vmatmul.mubr.bf16.gmra.mrb[120].mxu0 %v6035_v61 }
 0x1df   : > { %3051 = vmatprep.mubr.bf16.mxu0 %v6028_v29 }
 0x1e1   : > { %2947 = vmatmul.mubr.bf16.gmra.mrb[100].mxu1 %v5950_v18 }
 0x1e2   : > { %2954 = vmatprep.mubr.bf16.mxu1 %v6044_v47 }
 0x1e6   : > { %3052 = vmatmul.mubr.bf16.gmra.mrb[124].mxu0 %v6050_v1 }
 0x1e7   : > { %3059 = vmatprep.mubr.bf16.mxu0 %v6008_v6 }
 0x1e9   : > { %2955 = vmatmul.mubr.bf16.gmra.mrb[104].mxu1 %v5992_v26 }
 0x1ea   : > { %2962 = vmatprep.mubr.bf16.mxu1 %v6056_v14 }
 0x1ee   : > { %3060 = vmatmul.mubr.bf16.gmra.mrb[128].mxu0 %v6061_v10 }
 0x1ef   : > { %3197 = vmatprep.mubr.bf16.mxu0 %v5911_v12 }
 0x1f1   : > { %2963 = vmatmul.mubr.bf16.gmra.mrb[108].mxu1 %v6028_v29 }
 0x1f2   : > { %3100 = vmatprep.mubr.bf16.mxu1 %v5827_v35  ;;  %v4698_v35 = vld [vmem:[%s6292_s3 + $0x228] sm:$0xff]  }
 0x1f6   : > { %3198 = vmatmul.mubr.bf16.vlgmr.msra.gmra.mrb[132].mxu0 %v5755_v7  ;;  %v4696_v7 = vld [vmem:[%s6292_s3 + $0x218] sm:$0xff]  }
 0x1f7   : > { %3205 = vmatprep.mubr.bf16.mxu0 %v5958_v30 }
 0x1f9   : > { %3101 = vmatmul.mubr.bf16.vlgmr.msra.gmra.mrb[112].mxu1 %v5824_v53  ;;  %v4697_v53 = vld [vmem:[%s6292_s3 + $0x220] sm:$0xff]  }
 0x1fa   : > { %3108 = vmatprep.mubr.bf16.mxu1 %v5914_v38  ;;  %4478 = vmatpush3.bf16.msra.mxu1 %v4693_v0 }
 0x1fb   : > { %4479 = vmatprep.subr.bf16.mxu1 %v4694_v4 }
 0x1fe   : > { %3206 = vmatmul.mubr.bf16.gmra.mrb[136].mxu0 %v5839_v40  ;;  %4480 = vmatpush3.bf16.msra.mxu1 %v4694_v4  ;;  %v2055_v40 = vshrl.u32 %v5891_v24, 16  ;;  %v2254_v24 = vshrl.u32 %v6008_v6, 16 }
 0x1ff   : > { %3213 = vmatprep.mubr.bf16.mxu0 %v5987_v59  ;;  %4481 = vmatprep.subr.bf16.mxu1 %v4695_v45 }
 0x201   : > { %3109 = vmatmul.mubr.bf16.gmra.mrb[116].mxu1 %v5911_v12  ;;  %v4699_v12 = vld [vmem:[%s6292_s3 + $0x230] sm:$0xff]  }
 0x202   : > { %3116 = vmatprep.mubr.bf16.mxu1 %v5968_v56  ;;  %4482 = vmatpush3.bf16.msra.mxu1 %v4695_v45 }
 0x203   : > { %4483 = vmatprep.subr.bf16.mxu1 %v4696_v7 }
 0x206   : > { %3214 = vmatmul.mubr.bf16.gmra.mrb[140].mxu0 %v5924_v8  ;;  %4484 = vmatpush3.bf16.msra.mxu1 %v4696_v7  ;;  %v2057_v8 = vrot.slane %v2055_v40, 7 }
 0x207   : > { %3221 = vmatprep.mubr.bf16.mxu0 %v6022_v63  ;;  %4485 = vmatprep.subr.bf16.mxu1 %v4697_v53 }
 0x208   : > { %v2060_v58 = vor.u32 %v2058_v44, %v2057_v8 }
 0x209   : > { %3117 = vmatmul.mubr.bf16.gmra.mrb[120].mxu1 %v5958_v30  ;;  %v4700_v30 = vld [vmem:[%s6292_s3 + $0x238] sm:$0xff]  }
 0x20a   : > { %3124 = vmatprep.mubr.bf16.mxu1 %v6000_v11  ;;  %4486 = vmatpush3.bf16.msra.mxu1 %v4697_v53  ;;  %v2090_v32 = vsel %vm4941_vm3, 0, %v2060_v58 }
 0x20b   : > { %4487 = vmatprep.subr.bf16.mxu1 %v4698_v35  ;;  %v2275_v27 = vshll.u32 %v2090_v32, 16  ;;  %v2273_v33 = vshrl.u32 %v2090_v32, 16  ;;  %v2287_v52 = vrot.slane %v2090_v32, 1 }
 0x20d   : > { %v2277_v57 = vrot.slane %v2275_v27, 1 }
 0x20e   : > { %3222 = vmatmul.mubr.bf16.gmra.mrb[144].mxu0 %v5950_v18  ;;  %4488 = vmatpush3.bf16.msra.mxu1 %v4698_v35  ;;  %v2258_v18 = vrot.slane %v2256_v31, 1 }
 0x20f   : > { %3229 = vmatprep.mubr.bf16.mxu0 %v6044_v47  ;;  %4489 = vmatprep.subr.bf16.mxu1 %v4699_v12  ;;  %v2278_v0 = vor.u32 %v2277_v57, %v2273_v33 }
 0x210   : > { %v2259_v15 = vor.u32 %v2258_v18, %v2254_v24 }
 0x211   : > { %3125 = vmatmul.mubr.bf16.gmra.mrb[124].mxu1 %v5987_v59  ;;  %v2261_v59 = vshll.u32 %v6012_v34, 16 }
 0x212   : > { %3132 = vmatprep.mubr.bf16.mxu1 %v6035_v61  ;;  %4490 = vmatpush3.bf16.msra.mxu1 %v4699_v12 }
 0x213   : > { %4491 = vmatprep.subr.bf16.mxu1 %v4700_v30  ;;  %v2263_v60 = vrot.slane %v2261_v59, 1 }
 0x215   : > { %v2264_v13 = vsel %vm502_vm5, %v2259_v15, %v2263_v60 }
 0x216   : > { %3230 = vmatmul.mubr.bf16.gmra.mrb[148].mxu0 %v5992_v26  ;;  %4492 = vmatpush3.bf16.msra.mxu1 %v4700_v30  ;;  %v2100_v26 = vsel %vm4941_vm3, %v2057_v8, 0 }
 0x217   : > { %3237 = vmatprep.mubr.bf16.mxu0 %v6056_v14  ;;  %v2280_v49 = vshll.u32 %v2100_v26, 16 }
 0x219   : > { %3133 = vmatmul.mubr.bf16.gmra.mrb[128].mxu1 %v6022_v63  ;;  %v2282_v37 = vrot.slane %v2280_v49, 1 }
 0x21a   : > { %3140 = vmatprep.mubr.bf16.mxu1 %v6050_v1 }
 0x21b   : > { %v2283_v39 = vsel %vm502_vm5, %v2278_v0, %v2282_v37 }
 0x21e   : > { %3238 = vmatmul.mubr.bf16.gmra.mrb[152].mxu0 %v6028_v29 }
 0x21f   : > { %3245 = vmatprep.mubr.bf16.mxu0 %v2264_v13 }
 0x221   : > { %3141 = vmatmul.mubr.bf16.gmra.mrb[132].mxu1 %v6044_v47 }
 0x222   : > { %3148 = vmatprep.mubr.bf16.mxu1 %v6061_v10 }
 0x226   : > { %3246 = vmatmul.mubr.bf16.gmra.mrb[156].mxu0 %v6008_v6  ;;  %v2288_v6 = vrot.slane %v2100_v26, 1 }
 0x227   : > { %3253 = vmatprep.mubr.bf16.mxu0 %v2283_v39 }
 0x228   : > { %v2289_v34 = vsel %vm653_vm4, %v2287_v52, %v2288_v6 }
 0x229   : > { %3149 = vmatmul.mubr.bf16.gmra.mrb[136].mxu1 %v6056_v14 }
 0x22a   : > { %3156 = vmatprep.mubr.bf16.mxu1 %v6031_v25 }
 0x22e   : > { %3254 = vmatmul.mubr.bf16.gmra.mrb[160].mxu0 %v2090_v32 }
 0x231   : > { %3157 = vmatmul.mubr.bf16.gmra.mrb[140].mxu1 %v2264_v13 }
 0x232   : > { %4493 = vmatprep.mubr.bf16.mxu1 %v5914_v38 }
 0x239   : > { %4494 = vmatmul.mubr.bf16.vlgmr.msra.gmra.mrb[144].mxu1 %v5968_v56 }
 0x23a   : > { %4497 = vmatprep.mubr.bf16.mxu1 %v6000_v11 }
 0x241   : > { %4498 = vmatmul.mubr.bf16.gmra.mrb[148].mxu1 %v6035_v61 }
 0x242   : > { %4501 = vmatprep.mubr.bf16.mxu1 %v6050_v1 }
 0x249   : > { %4502 = vmatmul.mubr.bf16.gmra.mrb[152].mxu1 %v6061_v10 }
 0x24a   : > { %4505 = vmatprep.mubr.bf16.mxu1 %v6031_v25 }
 0x251   : > { %4506 = vmatmul.mubr.bf16.gmra.mrb[156].mxu1 %v2289_v34 }
 0x285   : > { %v4249_v28 = vpop.f32.mrb[100].mxu0 }
 0x286   : > { %v4250_v2 = vpop.f32.mrb[101].mxu0 }
 0x287   : > { %v4251_v38 = vadd.f32 %v4250_v2, %v4249_v28  ;;  %v4252_v16 = vpop.f32.mrb[102].mxu0 }
 0x288   : > { %v4253_v56 = vpop.f32.mrb[103].mxu0 }
 0x289   : > { %v4254_v20 = vadd.f32 %v4253_v56, %v4252_v16 }
 0x28c   : > { %v4185_v11 = vpop.f32.mrb[80].mxu1 }
 0x28d   : > { %v4186_v63 = vpop.f32.mrb[81].mxu1 }
 0x28e   : > { %v4187_v3 = vadd.f32 %v4186_v63, %v4185_v11  ;;  %v4188_v48 = vpop.f32.mrb[82].mxu1 }
 0x28f   : > { %v4189_v29 = vpop.f32.mrb[83].mxu1 }
 0x290   : > { %v2909_v25 = vadd.f32 %v4187_v3, %v6136_v21  ;;  %v4190_v46 = vadd.f32 %v4189_v29, %v4188_v48  ;;  %v4255_v36 = vpop.f32.mrb[104].mxu0 }
 0x291   : > { %v4256_v43 = vpop.f32.mrb[105].mxu0 }
 0x292   : > { %v2912_v61 = vadd.f32 %v4190_v46, %v6136_v21  ;;  %v4257_v62 = vadd.f32 %v4256_v43, %v4255_v36  ;;  %v4258_v9 = vpop.f32.mrb[106].mxu0  ;;  %v6140_v17 = vadd.f32 %v4251_v38, %v2909_v25 }
 0x293   : > { %v4259_v5 = vpop.f32.mrb[107].mxu0 }
 0x294   : > { %v4260_v47 = vadd.f32 %v4259_v5, %v4258_v9  ;;  %v4191_v42 = vpop.f32.mrb[84].mxu1  ;;  %v6142_v54 = vadd.f32 %v4254_v20, %v2912_v61 }
 0x295   : > { %v4192_v50 = vpop.f32.mrb[85].mxu1 }
 0x296   : > { %v4193_v55 = vadd.f32 %v4192_v50, %v4191_v42  ;;  %v4194_v51 = vpop.f32.mrb[86].mxu1 }
 0x297   : > { %v4195_v1 = vpop.f32.mrb[87].mxu1 }
 0x298   : > { %v2917_v41 = vadd.f32 %v4193_v55, %v6136_v21  ;;  %v4196_v22 = vadd.f32 %v4195_v1, %v4194_v51  ;;  %v4261_v14 = vpop.f32.mrb[108].mxu0 }
 0x299   : > { %v4262_v19 = vpop.f32.mrb[109].mxu0 }
 0x29a   : > { %v2920_v23 = vadd.f32 %v4196_v22, %v6136_v21  ;;  %v6146_v10 = vadd.f32 %v4257_v62, %v2917_v41  ;;  %v4263_v4 = vadd.f32 %v4262_v19, %v4261_v14  ;;  %v4264_v45 = vpop.f32.mrb[110].mxu0 }
 0x29b   : > { %v4265_v7 = vpop.f32.mrb[111].mxu0 }
 0x29c   : > { %v4197_v53 = vpop.f32.mrb[88].mxu1  ;;  %v6148_v35 = vadd.f32 %v4260_v47, %v2920_v23  ;;  %v4266_v40 = vadd.f32 %v4265_v7, %v4264_v45 }
 0x29d   : > { %v4198_v12 = vpop.f32.mrb[89].mxu1 }
 0x29e   : > { %v4199_v8 = vadd.f32 %v4198_v12, %v4197_v53  ;;  %v4200_v30 = vpop.f32.mrb[90].mxu1 }
 0x29f   : > { %v4201_v44 = vpop.f32.mrb[91].mxu1 }
 0x2a0   : > { %v2925_v31 = vadd.f32 %v4199_v8, %v6136_v21  ;;  %v4202_v58 = vadd.f32 %v4201_v44, %v4200_v30 }
 0x2a1   : > { %v4267_v18 = vpop.f32.mrb[112].mxu0 }
 0x2a2   : > { %v2928_v32 = vadd.f32 %v4202_v58, %v6136_v21  ;;  %v4268_v24 = vpop.f32.mrb[113].mxu0  ;;  %v6152_v59 = vadd.f32 %v4263_v4, %v2925_v31 }
 0x2a3   : > { %v4269_v15 = vadd.f32 %v4268_v24, %v4267_v18  ;;  %v4270_v27 = vpop.f32.mrb[114].mxu0 }
 0x2a4   : > { %v4271_v60 = vpop.f32.mrb[115].mxu0  ;;  %v4203_v26 = vpop.f32.mrb[92].mxu1  ;;  %v6154_v13 = vadd.f32 %v4266_v40, %v2928_v32 }
 0x2a5   : > { %v4272_v57 = vadd.f32 %v4271_v60, %v4270_v27  ;;  %v4204_v33 = vpop.f32.mrb[93].mxu1 }
 0x2a6   : > { %v4205_v49 = vadd.f32 %v4204_v33, %v4203_v26  ;;  %v4206_v0 = vpop.f32.mrb[94].mxu1 }
 0x2a7   : > { %v4207_v37 = vpop.f32.mrb[95].mxu1 }
 0x2a8   : > { %v2933_v39 = vadd.f32 %v4205_v49, %v6136_v21  ;;  %v4208_v52 = vadd.f32 %v4207_v37, %v4206_v0 }
 0x2a9   : > { %v4273_v6 = vpop.f32.mrb[116].mxu0 }
 0x2aa   : > { %v2936_v34 = vadd.f32 %v4208_v52, %v6136_v21  ;;  %v4274_v28 = vpop.f32.mrb[117].mxu0  ;;  %v6158_v2 = vadd.f32 %v4269_v15, %v2933_v39 }
 0x2ab   : > { %v4275_v38 = vadd.f32 %v4274_v28, %v4273_v6  ;;  %v4276_v16 = vpop.f32.mrb[118].mxu0 }
 0x2ac   : > { %v4277_v56 = vpop.f32.mrb[119].mxu0  ;;  %v4209_v20 = vpop.f32.mrb[96].mxu1  ;;  %v6160_v11 = vadd.f32 %v4272_v57, %v2936_v34 }
 0x2ad   : > { %v4278_v63 = vadd.f32 %v4277_v56, %v4276_v16  ;;  %v4210_v3 = vpop.f32.mrb[97].mxu1 }
 0x2ae   : > { %v4211_v48 = vadd.f32 %v4210_v3, %v4209_v20  ;;  %v4212_v29 = vpop.f32.mrb[98].mxu1 }
 0x2af   : > { %v4213_v25 = vpop.f32.mrb[99].mxu1 }
 0x2b0   : > { %v2941_v46 = vadd.f32 %v4211_v48, %v6136_v21  ;;  %v4214_v36 = vadd.f32 %v4213_v25, %v4212_v29 }
 0x2b1   : > { %v4279_v43 = vpop.f32.mrb[120].mxu0 }
 0x2b2   : > { %v2944_v61 = vadd.f32 %v4214_v36, %v6136_v21  ;;  %v4280_v62 = vpop.f32.mrb[121].mxu0  ;;  %v6164_v9 = vadd.f32 %v4275_v38, %v2941_v46 }
 0x2b3   : > { %v4281_v5 = vadd.f32 %v4280_v62, %v4279_v43  ;;  %v4282_v47 = vpop.f32.mrb[122].mxu0 }
 0x2b4   : > { %v4283_v42 = vpop.f32.mrb[123].mxu0  ;;  %v4215_v50 = vpop.f32.mrb[100].mxu1  ;;  %v6166_v55 = vadd.f32 %v4278_v63, %v2944_v61 }
 0x2b5   : > { %v4284_v51 = vadd.f32 %v4283_v42, %v4282_v47  ;;  %v4216_v1 = vpop.f32.mrb[101].mxu1 }
 0x2b6   : > { %v4217_v41 = vadd.f32 %v4216_v1, %v4215_v50  ;;  %v4218_v22 = vpop.f32.mrb[102].mxu1 }
 0x2b7   : > { %v4219_v14 = vpop.f32.mrb[103].mxu1 }
 0x2b8   : > { %v2949_v23 = vadd.f32 %v4217_v41, %v6136_v21  ;;  %v4220_v19 = vadd.f32 %v4219_v14, %v4218_v22 }
 0x2b9   : > { %v4285_v4 = vpop.f32.mrb[124].mxu0 }
 0x2ba   : > { %v2952_v45 = vadd.f32 %v4220_v19, %v6136_v21  ;;  %v4286_v7 = vpop.f32.mrb[125].mxu0  ;;  %v6170_v53 = vadd.f32 %v4281_v5, %v2949_v23 }
 0x2bb   : > { %v4287_v40 = vadd.f32 %v4286_v7, %v4285_v4  ;;  %v4288_v12 = vpop.f32.mrb[126].mxu0 }
 0x2bc   : > { %v4289_v8 = vpop.f32.mrb[127].mxu0  ;;  %v4221_v30 = vpop.f32.mrb[104].mxu1  ;;  %v6172_v44 = vadd.f32 %v4284_v51, %v2952_v45 }
 0x2bd   : > { %v4290_v31 = vadd.f32 %v4289_v8, %v4288_v12  ;;  %v4222_v58 = vpop.f32.mrb[105].mxu1 }
 0x2be   : > { %v4223_v18 = vadd.f32 %v4222_v58, %v4221_v30  ;;  %v4224_v32 = vpop.f32.mrb[106].mxu1 }
 0x2bf   : > { %v4225_v24 = vpop.f32.mrb[107].mxu1 }
 0x2c0   : > { %v2957_v15 = vadd.f32 %v4223_v18, %v6136_v21  ;;  %v4226_v27 = vadd.f32 %v4225_v24, %v4224_v32 }
 0x2c1   : > { %v4291_v60 = vpop.f32.mrb[128].mxu0 }
 0x2c2   : > { %v2960_v26 = vadd.f32 %v4226_v27, %v6136_v21  ;;  %v4292_v57 = vpop.f32.mrb[129].mxu0  ;;  %v6176_v33 = vadd.f32 %v4287_v40, %v2957_v15 }
 0x2c3   : > { %v4293_v49 = vadd.f32 %v4292_v57, %v4291_v60  ;;  %v4294_v0 = vpop.f32.mrb[130].mxu0 }
 0x2c4   : > { %v4295_v37 = vpop.f32.mrb[131].mxu0  ;;  %v4227_v39 = vpop.f32.mrb[108].mxu1  ;;  %v6178_v52 = vadd.f32 %v4290_v31, %v2960_v26 }
 0x2c5   : > { %v4296_v6 = vadd.f32 %v4295_v37, %v4294_v0  ;;  %v4228_v34 = vpop.f32.mrb[109].mxu1 }
 0x2c6   : > { %v4229_v28 = vadd.f32 %v4228_v34, %v4227_v39  ;;  %v4230_v38 = vpop.f32.mrb[110].mxu1 }
 0x2c7   : > { %v4231_v16 = vpop.f32.mrb[111].mxu1 }
 0x2c8   : > { %v2965_v56 = vadd.f32 %v4229_v28, %v6136_v21  ;;  %v4232_v20 = vadd.f32 %v4231_v16, %v4230_v38 }
 0x2c9   : > { %v4377_v63 = vpop.f32.mrb[132].mxu0 }
 0x2ca   : > { %v2968_v3 = vadd.f32 %v4232_v20, %v6136_v21  ;;  %v4378_v48 = vpop.f32.mrb[133].mxu0  ;;  %v6182_v29 = vadd.f32 %v4293_v49, %v2965_v56 }
 0x2cb   : > { %v4379_v25 = vadd.f32 %v4378_v48, %v4377_v63  ;;  %v4380_v46 = vpop.f32.mrb[134].mxu0 }
 0x2cc   : > { %v4381_v36 = vpop.f32.mrb[135].mxu0  ;;  %v4313_v43 = vpop.f32.mrb[112].mxu1  ;;  %v6184_v61 = vadd.f32 %v4296_v6, %v2968_v3 }
 0x2cd   : > { %v4382_v62 = vadd.f32 %v4381_v36, %v4380_v46  ;;  %v4314_v5 = vpop.f32.mrb[113].mxu1 }
 0x2ce   : > { %v4315_v47 = vadd.f32 %v4314_v5, %v4313_v43  ;;  %v4316_v42 = vpop.f32.mrb[114].mxu1 }
 0x2cf   : > { %v4317_v50 = vpop.f32.mrb[115].mxu1 }
 0x2d0   : > { %v3103_v51 = vadd.f32 %v4315_v47, %v6140_v17  ;;  %v4318_v1 = vadd.f32 %v4317_v50, %v4316_v42 }
 0x2d1   : > { %v4383_v41 = vpop.f32.mrb[136].mxu0 }
 0x2d2   : > { %v3106_v21 = vadd.f32 %v4318_v1, %v6142_v54  ;;  %v4384_v22 = vpop.f32.mrb[137].mxu0  ;;  %v6188_v14 = vadd.f32 %v4379_v25, %v3103_v51 }
 0x2d3   : > { %v4385_v23 = vadd.f32 %v4384_v22, %v4383_v41  ;;  %v4386_v19 = vpop.f32.mrb[138].mxu0 }
 0x2d4   : > { %v4387_v4 = vpop.f32.mrb[139].mxu0  ;;  %v4319_v45 = vpop.f32.mrb[116].mxu1  ;;  %v6190_v7 = vadd.f32 %v4382_v62, %v3106_v21 }
 0x2d5   : > { %v4388_v40 = vadd.f32 %v4387_v4, %v4386_v19  ;;  %v4320_v12 = vpop.f32.mrb[117].mxu1 }
 0x2d6   : > { %v4321_v8 = vadd.f32 %v4320_v12, %v4319_v45  ;;  %v4322_v30 = vpop.f32.mrb[118].mxu1 }
 0x2d7   : > { %v4323_v31 = vpop.f32.mrb[119].mxu1 }
 0x2d8   : > { %v3111_v17 = vadd.f32 %v4321_v8, %v6146_v10  ;;  %v4324_v58 = vadd.f32 %v4323_v31, %v4322_v30 }
 0x2d9   : > { %v4389_v18 = vpop.f32.mrb[140].mxu0 }
 0x2da   : > { %v3114_v54 = vadd.f32 %v4324_v58, %v6148_v35  ;;  %v4390_v32 = vpop.f32.mrb[141].mxu0  ;;  %v6194_v24 = vadd.f32 %v4385_v23, %v3111_v17 }
 0x2db   : > { %v4391_v15 = vadd.f32 %v4390_v32, %v4389_v18  ;;  %v4392_v27 = vpop.f32.mrb[142].mxu0 }
 0x2dc   : > { %v4393_v60 = vpop.f32.mrb[143].mxu0  ;;  %v4325_v26 = vpop.f32.mrb[120].mxu1  ;;  %v6196_v57 = vadd.f32 %v4388_v40, %v3114_v54 }
 0x2dd   : > { %v4394_v49 = vadd.f32 %v4393_v60, %v4392_v27  ;;  %v4326_v0 = vpop.f32.mrb[121].mxu1 }
 0x2de   : > { %v4327_v37 = vadd.f32 %v4326_v0, %v4325_v26  ;;  %v4328_v39 = vpop.f32.mrb[122].mxu1 }
 0x2df   : > { %v4329_v6 = vpop.f32.mrb[123].mxu1 }
 0x2e0   : > { %v3119_v10 = vadd.f32 %v4327_v37, %v6152_v59  ;;  %v4330_v34 = vadd.f32 %v4329_v6, %v4328_v39 }
 0x2e1   : > { %v4395_v28 = vpop.f32.mrb[144].mxu0 }
 0x2e2   : > { %v3122_v35 = vadd.f32 %v4330_v34, %v6154_v13  ;;  %v4396_v38 = vpop.f32.mrb[145].mxu0  ;;  %v6200_v16 = vadd.f32 %v4391_v15, %v3119_v10 }
 0x2e3   : > { %v4397_v56 = vadd.f32 %v4396_v38, %v4395_v28  ;;  %v4398_v20 = vpop.f32.mrb[146].mxu0 }
 0x2e4   : > { %v4399_v63 = vpop.f32.mrb[147].mxu0  ;;  %v4331_v3 = vpop.f32.mrb[124].mxu1  ;;  %v6202_v48 = vadd.f32 %v4394_v49, %v3122_v35 }
 0x2e5   : > { %v4400_v25 = vadd.f32 %v4399_v63, %v4398_v20  ;;  %v4332_v46 = vpop.f32.mrb[125].mxu1 }
 0x2e6   : > { %v4333_v36 = vadd.f32 %v4332_v46, %v4331_v3  ;;  %v4334_v43 = vpop.f32.mrb[126].mxu1 }
 0x2e7   : > { %v4335_v62 = vpop.f32.mrb[127].mxu1 }
 0x2e8   : > { %v3127_v59 = vadd.f32 %v4333_v36, %v6158_v2  ;;  %v4336_v5 = vadd.f32 %v4335_v62, %v4334_v43 }
 0x2e9   : > { %v4401_v47 = vpop.f32.mrb[148].mxu0 }
 0x2ea   : > { %v3130_v13 = vadd.f32 %v4336_v5, %v6160_v11  ;;  %v4402_v42 = vpop.f32.mrb[149].mxu0  ;;  %v6206_v50 = vadd.f32 %v4397_v56, %v3127_v59 }
 0x2eb   : > { %v4403_v51 = vadd.f32 %v4402_v42, %v4401_v47  ;;  %v4404_v1 = vpop.f32.mrb[150].mxu0 }
 0x2ec   : > { %v4405_v41 = vpop.f32.mrb[151].mxu0  ;;  %v4337_v21 = vpop.f32.mrb[128].mxu1  ;;  %v6208_v22 = vadd.f32 %v4400_v25, %v3130_v13 }
 0x2ed   : > { %v4406_v23 = vadd.f32 %v4405_v41, %v4404_v1  ;;  %v4338_v19 = vpop.f32.mrb[129].mxu1 }
 0x2ee   : > { %v4339_v4 = vadd.f32 %v4338_v19, %v4337_v21  ;;  %v4340_v45 = vpop.f32.mrb[130].mxu1 }
 0x2ef   : > { %v4341_v40 = vpop.f32.mrb[131].mxu1 }
 0x2f0   : > { %v3135_v2 = vadd.f32 %v4339_v4, %v6164_v9  ;;  %v4342_v12 = vadd.f32 %v4341_v40, %v4340_v45  ;;  %v4709_v45 = vld [vmem:[%s4935_s30 + $0x8] sm:$0xff]  }
 0x2f1   : > { %v4407_v8 = vpop.f32.mrb[152].mxu0  ;;  %v3361_v40 = vunpack.c.l.bf16 %v4709_v45 }
 0x2f2   : > { %v3138_v11 = vadd.f32 %v4342_v12, %v6166_v55  ;;  %v4408_v30 = vpop.f32.mrb[153].mxu0  ;;  %v6212_v31 = vadd.f32 %v4403_v51, %v3135_v2  ;;  %v4710_v12 = vld [vmem:[%s4935_s30] sm:$0xff]  }
 0x2f3   : > { %v4409_v17 = vadd.f32 %v4408_v30, %v4407_v8  ;;  %v4410_v58 = vpop.f32.mrb[154].mxu0  ;;  %v3359_v8 = vunpack.c.l.bf16 %v4710_v12 }
 0x2f4   : > { %v4411_v18 = vpop.f32.mrb[155].mxu0  ;;  %v4343_v54 = vpop.f32.mrb[132].mxu1  ;;  %v6214_v32 = vadd.f32 %v4406_v23, %v3138_v11 }
 0x2f5   : > { %v4412_v15 = vadd.f32 %v4411_v18, %v4410_v58  ;;  %v4344_v27 = vpop.f32.mrb[133].mxu1  ;;  %v3362_v58 = vunpack.c.h.bf16 %v4709_v45  ;;  %v3360_v18 = vunpack.c.h.bf16 %v4710_v12 }
 0x2f6   : > { %v4345_v60 = vadd.f32 %v4344_v27, %v4343_v54  ;;  %v4346_v26 = vpop.f32.mrb[134].mxu1 }
 0x2f7   : > { %v4347_v49 = vpop.f32.mrb[135].mxu1 }
 0x2f8   : > { %v3143_v9 = vadd.f32 %v4345_v60, %v6170_v53  ;;  %v4348_v0 = vadd.f32 %v4347_v49, %v4346_v26 }
 0x2f9   : > { %v4413_v37 = vpop.f32.mrb[156].mxu0 }
 0x2fa   : > { %v3146_v55 = vadd.f32 %v4348_v0, %v6172_v44  ;;  %v4414_v39 = vpop.f32.mrb[157].mxu0  ;;  %v6218_v6 = vadd.f32 %v4409_v17, %v3143_v9 }
 0x2fb   : > { %v4415_v10 = vadd.f32 %v4414_v39, %v4413_v37  ;;  %v4416_v34 = vpop.f32.mrb[158].mxu0  ;;  %v4711_v37 = vld [vmem:[%s4935_s30 + $0x18] sm:$0xff]  }
 0x2fc   : > { %v4417_v28 = vpop.f32.mrb[159].mxu0  ;;  %v4349_v35 = vpop.f32.mrb[136].mxu1  ;;  %v6220_v38 = vadd.f32 %v4412_v15, %v3146_v55  ;;  %v3365_v55 = vunpack.c.l.bf16 %v4711_v37 }
 0x2fd   : > { %v4418_v56 = vadd.f32 %v4417_v28, %v4416_v34  ;;  %v4350_v20 = vpop.f32.mrb[137].mxu1 }
 0x2fe   : > { %v4351_v63 = vadd.f32 %v4350_v20, %v4349_v35  ;;  %v4352_v3 = vpop.f32.mrb[138].mxu1 }
 0x2ff   : > { %v4353_v25 = vpop.f32.mrb[139].mxu1 }
 0x300   : > { %v3151_v53 = vadd.f32 %v4351_v63, %v6176_v33  ;;  %v4354_v46 = vadd.f32 %v4353_v25, %v4352_v3 }
 0x301   : > { %v4419_v44 = vpop.f32.mrb[160].mxu0 }
 0x302   : > { %v3154_v36 = vadd.f32 %v4354_v46, %v6178_v52  ;;  %v4420_v43 = vpop.f32.mrb[161].mxu0  ;;  %v6224_v62 = vadd.f32 %v4415_v10, %v3151_v53  ;;  %v4712_v10 = vld [vmem:[%s4935_s30 + $0x10] sm:$0xff]  }
 0x303   : > { %v4421_v59 = vadd.f32 %v4420_v43, %v4419_v44  ;;  %v4422_v5 = vpop.f32.mrb[162].mxu0  ;;  %v3363_v34 = vunpack.c.l.bf16 %v4712_v10  ;;  %v3364_v25 = vunpack.c.h.bf16 %v4712_v10 }
 0x304   : > { %v4423_v47 = vpop.f32.mrb[163].mxu0  ;;  %v4355_v13 = vpop.f32.mrb[140].mxu1  ;;  %v6227_v42 = vadd.f32 %v4418_v56, %v3154_v36  ;;  %v3366_v56 = vunpack.c.h.bf16 %v4711_v37 }
 0x305   : > { %v4424_v51 = vadd.f32 %v4423_v47, %v4422_v5  ;;  %v4356_v33 = vpop.f32.mrb[141].mxu1 }
 0x306   : > { %v4357_v1 = vadd.f32 %v4356_v33, %v4355_v13  ;;  %v4358_v41 = vpop.f32.mrb[142].mxu1  ;;  %v4713_v13 = vld [vmem:[%s4935_s30 + $0x28] sm:$0xff]  }
 0x307   : > { %v4359_v21 = vpop.f32.mrb[143].mxu1 }
 0x308   : > { %v3159_v52 = vadd.f32 %v4357_v1, %v6182_v29  ;;  %v4360_v23 = vadd.f32 %v4359_v21, %v4358_v41  ;;  %v4714_v41 = vld [vmem:[%s4935_s30 + $0x20] sm:$0xff]  }
 0x309   : > { %v3367_v21 = vunpack.c.l.bf16 %v4714_v41 }
 0x30a   : > { %v3162_v19 = vadd.f32 %v4360_v23, %v6184_v61  ;;  %v6232_v4 = vadd.f32 %v4421_v59, %v3159_v52 }
 0x30c   : > { %v4495_v2 = vpop.f32.mrb[144].mxu1  ;;  %v6237_v11 = vadd.f32 %v4424_v51, %v3162_v19  ;;  %v3369_v51 = vunpack.c.l.bf16 %v4713_v13  ;;  %v3370_v19 = vunpack.c.h.bf16 %v4713_v13 }
 0x30d   : > { %v3305_v30 = vadd.f32 %v4495_v2, %v6194_v24  ;;  %v3296_v17 = vpop.f32.mrb[145].mxu1  ;;  %v3368_v2 = vunpack.c.h.bf16 %v4714_v41 }
 0x30e   : > { %v3297_v29 = vadd.f32 %v3296_v17, %v6188_v14  ;;  %v4496_v61 = vpop.f32.mrb[146].mxu1 }
 0x30f   : > { %v3377_v54 = vadd.f32 %v3361_v40, %v3305_v30  ;;  %v3308_v15 = vadd.f32 %v4496_v61, %v6196_v57  ;;  %v3299_v27 = vpop.f32.mrb[147].mxu1 }
 0x310   : > { %v3375_v60 = vadd.f32 %v3359_v8, %v3297_v29  ;;  %v3300_v26 = vadd.f32 %v3299_v27, %v6190_v7 }
 0x311   : > { %v3378_v49 = vadd.f32 %v3362_v58, %v3308_v15  ;;  %v3393_v24 = vmax.f32 %v3377_v54, 0.0  ;;  %v4715_v54 = vld [vmem:[%s4935_s30 + $0x38] sm:$0xff]  }
 0x312   : > { %v3376_v9 = vadd.f32 %v3360_v18, %v3300_v26  ;;  %v3391_v39 = vmax.f32 %v3375_v60, 0.0  ;;  %v3373_v15 = vunpack.c.l.bf16 %v4715_v54  ;;  %v4716_v26 = vld [vmem:[%s4935_s30 + $0x30] sm:$0xff]  }
 0x313   : > { %v3394_v0 = vmax.f32 %v3378_v49, 0.0  ;;  %v3371_v49 = vunpack.c.l.bf16 %v4716_v26 }
 0x314   : > { %v3392_v14 = vmax.f32 %v3376_v9, 0.0  ;;  %v4499_v57 = vpop.f32.mrb[148].mxu1 }
 0x315   : > { %v3808_v7 = vpack.c.bf16 %v3394_v0, %v3393_v24  ;;  %v3321_v28 = vadd.f32 %v4499_v57, %v6206_v50  ;;  %v3312_v35 = vpop.f32.mrb[149].mxu1  ;;  %v3374_v0 = vunpack.c.h.bf16 %v4715_v54 }
 0x316   : > { %v3803_v20 = vpack.c.bf16 %v3392_v14, %v3391_v39  ;;  %v3313_v63 = vadd.f32 %v3312_v35, %v6200_v16  ;;  %v4500_v3 = vpop.f32.mrb[150].mxu1  ;;  %v3372_v39 = vunpack.c.h.bf16 %v4716_v26 }
 0x317   : > { %3840 = vst [vmem:[%s6247_s16 + $0x8] sm:$0xff] %v3808_v7   ;;  %v3381_v53 = vadd.f32 %v3365_v55, %v3321_v28  ;;  %v3324_v46 = vadd.f32 %v4500_v3, %v6208_v22  ;;  %v3315_v44 = vpop.f32.mrb[151].mxu1 }
 0x318   : > { %3804 = vst [vmem:[%s6247_s16] sm:$0xff] %v3803_v20   ;;  %v3379_v36 = vadd.f32 %v3363_v34, %v3313_v63  ;;  %v3316_v43 = vadd.f32 %v3315_v44, %v6202_v48 }
 0x319   : > { %v3382_v59 = vadd.f32 %v3366_v56, %v3324_v46  ;;  %v3397_v5 = vmax.f32 %v3381_v53, 0.0 }
 0x31a   : > { %v3380_v50 = vadd.f32 %v3364_v25, %v3316_v43  ;;  %v3395_v16 = vmax.f32 %v3379_v36, 0.0 }
 0x31b   : > { %v3398_v47 = vmax.f32 %v3382_v59, 0.0 }
 0x31c   : > { %v3396_v33 = vmax.f32 %v3380_v50, 0.0  ;;  %v4503_v1 = vpop.f32.mrb[152].mxu1 }
 0x31d   : > { %v3818_v52 = vpack.c.bf16 %v3398_v47, %v3397_v5  ;;  %v3337_v22 = vadd.f32 %v4503_v1, %v6218_v6  ;;  %v3328_v23 = vpop.f32.mrb[153].mxu1 }
 0x31e   : > { %v3813_v48 = vpack.c.bf16 %v3396_v33, %v3395_v16  ;;  %v3329_v45 = vadd.f32 %v3328_v23, %v6212_v31  ;;  %v4504_v40 = vpop.f32.mrb[154].mxu1 }
 0x31f   : > { %3842 = vst [vmem:[%s6247_s16 + $0x18] sm:$0xff] %v3818_v52   ;;  %v3385_v12 = vadd.f32 %v3369_v51, %v3337_v22  ;;  %v3340_v8 = vadd.f32 %v4504_v40, %v6220_v38  ;;  %v3331_v30 = vpop.f32.mrb[155].mxu1 }
 0x320   : > { %3841 = vst [vmem:[%s6247_s16 + $0x10] sm:$0xff] %v3813_v48   ;;  %v3383_v17 = vadd.f32 %v3367_v21, %v3329_v45  ;;  %v3332_v58 = vadd.f32 %v3331_v30, %v6214_v32 }
 0x321   : > { %v3386_v29 = vadd.f32 %v3370_v19, %v3340_v8  ;;  %v3401_v61 = vmax.f32 %v3385_v12, 0.0 }
 0x322   : > { %v3384_v6 = vadd.f32 %v3368_v2, %v3332_v58  ;;  %v3399_v31 = vmax.f32 %v3383_v17, 0.0 }
 0x323   : > { %v3402_v18 = vmax.f32 %v3386_v29, 0.0 }
 0x324   : > { %v3400_v27 = vmax.f32 %v3384_v6, 0.0  ;;  %v4507_v60 = vpop.f32.mrb[156].mxu1 }
 0x325   : > { %v3828_v9 = vpack.c.bf16 %v3402_v18, %v3401_v61  ;;  %v3353_v38 = vadd.f32 %v4507_v60, %v6232_v4  ;;  %v3344_v24 = vpop.f32.mrb[157].mxu1 }
 0x326   : > { %v3823_v37 = vpack.c.bf16 %v3400_v27, %v3399_v31  ;;  %v3345_v32 = vadd.f32 %v3344_v24, %v6224_v62  ;;  %v4508_v55 = vpop.f32.mrb[158].mxu1 }
 0x327   : > { %3844 = vst [vmem:[%s6247_s16 + $0x28] sm:$0xff] %v3828_v9   ;;  %v3389_v14 = vadd.f32 %v3373_v15, %v3353_v38  ;;  %v3356_v57 = vadd.f32 %v4508_v55, %v6237_v11  ;;  %v3347_v10 = vpop.f32.mrb[159].mxu1 }
 0x328   : > { %3843 = vst [vmem:[%s6247_s16 + $0x20] sm:$0xff] %v3823_v37   ;;  %v3387_v34 = vadd.f32 %v3371_v49, %v3345_v32  ;;  %v3348_v7 = vadd.f32 %v3347_v10, %v6227_v42 }
 0x329   : > { %v3390_v28 = vadd.f32 %v3374_v0, %v3356_v57  ;;  %v3405_v35 = vmax.f32 %v3389_v14, 0.0 }
 0x32a   : > { %v3388_v4 = vadd.f32 %v3372_v39, %v3348_v7  ;;  %v3403_v20 = vmax.f32 %v3387_v34, 0.0 }
 0x32b   : > { %v3406_v56 = vmax.f32 %v3390_v28, 0.0 }
 0x32c   : > { %v3404_v63 = vmax.f32 %v3388_v4, 0.0 }
 0x32d   : > { %v3838_v62 = vpack.c.bf16 %v3406_v56, %v3405_v35 }
 0x32e   : > { %v3833_v3 = vpack.c.bf16 %v3404_v63, %v3403_v20 }
 0x32f   : > { %3846 = vst [vmem:[%s6247_s16 + $0x38] sm:$0xff] %v3838_v62  }
 0x330   : > { %3845 = vst [vmem:[%s6247_s16 + $0x30] sm:$0xff] %v3833_v3  }
 0x331 PF: > { %s15_s22 = sadd.s32 1, %s4755_s22   ;;  %s6312_s18 = smov %s4747_s20 }
 0x332   : > { %p12_p11 = scmp.ge.s32.totalorder %s15_s22, 6   ;;  %s6313_s19 = smov %s4751_s21 }
 0x333   : > { %s6314_s20 = smov %s6317_s23  ;;  %s6315_s21 = smov %s6321_s24 }
 0x334   :  { %14 = sbr.rel (!%p12_p11) target bundleno = 3 (0x3), region = 73 }

</bundles_post_ra>
